<compile_context>
chip_gen: v7x
topology: tpu7x:2x2x1
jax: 0.10.0
libtpu: 0.0.40
codegen_flags: <defaults>
</compile_context>

<pallas_src>
import numpy as np
import jax
import jax.numpy as jnp
from jax.experimental import pallas as pl
from jax.experimental.pallas import tpu as pltpu

LANE = 128


def _rup(v, m):
    return ((v + m - 1) // m) * m


# ------------------------------ parameters --------------------------------- #

def init_params(key, channels=4, num_layers=2):
    """Conv stack layout identical to the PyTorch module."""
    cfg = [((7, 3), (2, 1), (3, 1), 1, channels)]
    c = channels
    for _ in range(num_layers):
        cfg.append(((5, 3), (2, 1), (2, 1), c, 2 * c))
        c *= 2
    cfg.append(((3, 3), (1, 1), (1, 1), c, 1))          # post conv
    weights = []
    for (kern, stride, padhw, cin, cout) in cfg:
        key, wk, bk = jax.random.split(key, 3)
        w = 0.1 * jax.random.normal(wk, (cout, cin, kern[0], kern[1]), jnp.float32)
        b = 0.01 * jax.random.normal(bk, (cout,), jnp.float32)
        weights.append((w, b))
    layer_cfg = tuple((kern, stride, padhw) for (kern, stride, padhw, _, _) in cfg)
    return weights, layer_cfg


# ----------------------------- fused forward -------------------------------- #

def make_discriminator_r(resolution, layer_cfg, compute_dtype=jnp.bfloat16,
                         num_batch_groups=1):
    hop = resolution
    n_fft = 4 * resolution
    n_freq = n_fft // 2 + 1
    n_blk = n_fft // hop                      # == 4 since n_fft = 4 * hop
    F_pad = _rup(n_freq, LANE)                # lane-padded spectral width
    K_stft = _rup(n_fft, LANE)                # lane-padded frame length (GEMM K)

    # Periodic-Hann-folded DFT matrix [win*cos | -win*sin]; K and both N halves
    # are zero-padded to lane-aligned multiples of 128 (f32 for numerics).
    n = np.arange(n_fft, dtype=np.float64)
    win = 0.5 * (1.0 - np.cos(2.0 * np.pi * n / n_fft))
    f = np.arange(n_freq, dtype=np.float64)
    ang = 2.0 * np.pi * np.outer(n, f) / n_fft
    wdft_np = np.zeros((K_stft, 2 * F_pad), np.float32)
    wdft_np[:n_fft, :n_freq] = (win[:, None] * np.cos(ang)).astype(np.float32)
    wdft_np[:n_fft, F_pad:F_pad + n_freq] = (win[:, None] * -np.sin(ang)).astype(np.float32)

    # Static per-layer selection tensors folding frequency-axis im2col, stride
    # and zero-padding into the weights: S[h, ho, kh] = (h == sh*ho + kh - ph).
    h_dims, sel = [], []
    hin = n_freq
    for ((kh_sz, kw_sz), (sh, sw), (ph, pw)) in layer_cfg:
        assert sw == 1 and kw_sz == 3 and pw == 1, \
            "frame axis must be a 3-tap stride-1 'same' conv"
        hout = (hin + 2 * ph - kh_sz) // sh + 1
        hh = np.arange(hin)[:, None, None]
        oo = np.arange(hout)[None, :, None]
        kk = np.arange(kh_sz)[None, None, :]
        sel.append((hh + ph - sh * oo == kk).astype(np.float32))
        h_dims.append((hin, hout))
        hin = hout

    n_layers = len(layer_cfg)

    @jax.jit
    def forward(x, weights):
        B, _, T = x.shape
        Wf = 1 + T // hop                         # number of STFT frames
        G = num_batch_groups                      # grid steps (2 on v7x megacore)
        assert B % G == 0
        Bg = B // G
        H = Wf + 2                                # per-batch halo'd frame rows
        Mext = Bg * H - 2                         # conv-GEMM M (incl. skipped rows)

        # ---- cheap XLA prologue: channel mean, reflect pad, framing, K-pad.
        xm = jnp.mean(x, axis=1)
        xp = jnp.pad(xm, ((0, 0), (n_fft // 2, n_fft // 2)), mode="reflect")
        rem = (-xp.shape[1]) % hop
        if rem:
            xp = jnp.pad(xp, ((0, 0), (0, rem)))
        n_rows = xp.shape[1] // hop
        assert n_rows >= Wf + n_blk - 1
        xr = xp.reshape(B, n_rows, hop)
        # frame i = hop-rows i..i+n_blk-1 (samples [i*hop, i*hop+n_fft)).
        frames = jnp.concatenate([xr[:, j:j + Wf, :] for j in range(n_blk)], axis=-1)
        frames = jnp.pad(frames, ((0, 0), (0, 0), (0, K_stft - n_fft)))  # (B,Wf,K_stft)

        wdft = jnp.asarray(wdft_np)                                      # f32

        # ---- fold each Conv2d into (3, Kpad, Npad) GEMM weights + bias row.
        mats, meta = [], []
        for (w, b), S, (hin_l, hout_l), ((_, kw_sz), _, _) in zip(
                weights, sel, h_dims, layer_cfg):
            cout, cin, _, _ = w.shape
            Kv, Nv = cin * hin_l, cout * hout_l
            Kp, Np = _rup(Kv, LANE), _rup(Nv, LANE)
            bc = jnp.einsum("hok,cikq->qihco", jnp.asarray(S), w)
            bc = bc.reshape(kw_sz, Kv, Nv)
            bc = jnp.pad(bc, ((0, 0), (0, Kp - Kv), (0, Np - Nv))).astype(compute_dtype)
            bias = jnp.pad(jnp.repeat(b, hout_l), (0, Np - Nv))[None, :].astype(jnp.float32)
            mats.append((bc, bias))
            meta.append((kw_sz, cout, hout_l, Kp, Np))
        CF = max([F_pad] + [m[3] for m in meta])    # halo-scratch lane width

        def kernel(frames_ref, wdft_ref, *refs):
            lay_refs = refs[:2 * n_layers]
            out_refs = refs[2 * n_layers:2 * n_layers + n_layers]
            a_pad = refs[-1]                        # (Bg*H, CF) f32 halo scratch

            # Zero once: halo rows (frame-axis zero padding) stay zero forever;
            # data rows are overwritten every layer.
            a_pad[...] = jnp.zeros_like(a_pad)

            # ---- STFT magnitude (f32 GEMM; reference .abs() has no epsilon).
            wdft_v = wdft_ref[...]
            for b in range(Bg):
                st = jnp.dot(frames_ref[b], wdft_v,
                             preferred_element_type=jnp.float32)   # (Wf, 2*F_pad)
                re = st[:, :F_pad]
                im = st[:, F_pad:]
                mag = jnp.sqrt(re * re + im * im)                  # (Wf, F_pad) f32
                a_pad[b * H + 1:b * H + 1 + Wf, 0:F_pad] = mag

            # ---- conv stack: one bf16 cast per layer + 3 sublane-shifted GEMMs
            # accumulated into a single running f32 chain.
            for l in range(n_layers):
                kw_sz, _, _, Kp, Np = meta[l]
                a_all = a_pad[...]
                a_bf = (a_all[:, :Kp] if Kp < CF else a_all).astype(compute_dtype)
                acc = None
                for kw in range(kw_sz):
                    part = jnp.dot(a_bf[kw:kw + Mext, :], lay_refs[2 * l][kw],
                                   preferred_element_type=jnp.float32)
                    acc = part if acc is None else acc + part
                out = acc + lay_refs[2 * l + 1][...]               # (Mext, Np) f32
                # F.leaky_relu(x, 0.1) result is discarded in the reference -> no act.
                for b in range(Bg):
                    rows = out[b * H:b * H + Wf, :]
                    out_refs[l][b] = rows                          # lane-dense store
                    if l < n_layers - 1:
                        a_pad[b * H + 1:b * H + 1 + Wf, 0:Np] = rows

        # ---- pallas_call plumbing: grid = number of batch groups (1 step by
        # default; set num_batch_groups=2 on v7x to shard batch over both TCs).
        def const_spec(shape):
            return pl.BlockSpec(shape, lambda g: (0,) * len(shape))

        in_specs = [pl.BlockSpec((Bg, Wf, K_stft), lambda g: (g, 0, 0)),
                    const_spec(wdft.shape)]
        flat_ins = [frames, wdft]
        # TODO(synk): for real MRD scales on v7x, single-buffer these constant
        # blocks (pipeline_mode=pl.Buffered(1)) and replace the dense O(Hin*Hout)
        # folded Bc with a kh-banded / HBM-streamed form before scaling up; also
        # consider bf16 fmap outputs on v5e to halve HBM writeback.
        for bc, bias in mats:
            in_specs += [const_spec(bc.shape), const_spec(bias.shape)]
            flat_ins += [bc, bias]

        out_shapes = tuple(jax.ShapeDtypeStruct((B, Wf, Np), jnp.float32)
                           for (_, _, _, _, Np) in meta)
        out_specs = tuple(pl.BlockSpec((Bg, Wf, Np), lambda g: (g, 0, 0))
                          for (_, _, _, _, Np) in meta)

        flops = G * (2 * Bg * Wf * K_stft * 2 * F_pad
                     + sum(2 * Mext * kw * Kp * Np for (kw, _, _, Kp, Np) in meta))
        bytes_acc = (frames.size * 4 + wdft.size * 4
                     + sum(bc.size * bc.dtype.itemsize + bias.size * 4
                           for bc, bias in mats)
                     + sum(B * Wf * Np * 4 for (_, _, _, _, Np) in meta))

        outs = pl.pallas_call(
            kernel,
            out_shape=out_shapes,
            grid=(G,),
            in_specs=in_specs,
            out_specs=out_specs,
            scratch_shapes=[pltpu.VMEM((Bg * H, CF), jnp.float32)],
            compiler_params=pltpu.CompilerParams(
                dimension_semantics=("parallel",)),
            cost_estimate=pl.CostEstimate(
                flops=flops,
                transcendentals=B * Wf * F_pad,
                bytes_accessed=bytes_acc),
        )(*flat_ins)

        # (B, Wf, Npad) -> torch NCHW (B, Cout, Hout, Wf); drop lane padding.
        feats = [o[:, :, :co * ho].reshape(B, Wf, co, ho).transpose(0, 2, 3, 1)
                 for o, (_, co, ho, _, _) in zip(outs, meta)]
        return feats[-1], feats

    return forward


# ----------------------------------- main ----------------------------------- #

if __name__ == "__main__":
    key = jax.random.PRNGKey(0)
    resolution = 8            # hop = 8, n_fft = 32, n_freq = 17
    channels = 4
    num_layers = 2
    B, C_audio, T = 2, 2, 64

    kx, kp = jax.random.split(key)
    x = jax.random.normal(kx, (B, C_audio, T), jnp.float32)
    weights, layer_cfg = init_params(kp, channels=channels, num_layers=num_layers)

    fwd = make_discriminator_r(resolution, layer_cfg)
    out, feats = fwd(x, weights)
    jax.block_until_ready(out)
    for ft in feats:
        jax.block_until_ready(ft)

    # spec (2,1,17,9) -> conv (2,4,9,9) -> (2,8,5,9) -> (2,16,3,9) -> post (2,1,3,9)
    assert out.shape == (B, 1, 3, 9)
    assert feats[0].shape == (B, channels, 9, 9)
    assert feats[1].shape == (B, 2 * channels, 5, 9)
    assert feats[2].shape == (B, 4 * channels, 3, 9)
    assert len(feats) == num_layers + 2
    print("KERNEL_OK")
</pallas_src>

<mosaic_0001>
module attributes {stable_mosaic.version = 11 : i64} {
  func.func @kernel(%arg0: i32, %arg1: memref<2x9x128xf32, #tpu.memory_space<vmem>>, %arg2: memref<128x256xf32, #tpu.memory_space<vmem>>, %arg3: memref<3x128x128xbf16, #tpu.memory_space<vmem>>, %arg4: memref<1x128xf32, #tpu.memory_space<vmem>>, %arg5: memref<3x128x128xbf16, #tpu.memory_space<vmem>>, %arg6: memref<1x128xf32, #tpu.memory_space<vmem>>, %arg7: memref<3x128x128xbf16, #tpu.memory_space<vmem>>, %arg8: memref<1x128xf32, #tpu.memory_space<vmem>>, %arg9: memref<3x128x128xbf16, #tpu.memory_space<vmem>>, %arg10: memref<1x128xf32, #tpu.memory_space<vmem>>, %arg11: memref<2x9x128xf32, #tpu.memory_space<vmem>>, %arg12: memref<2x9x128xf32, #tpu.memory_space<vmem>>, %arg13: memref<2x9x128xf32, #tpu.memory_space<vmem>>, %arg14: memref<2x9x128xf32, #tpu.memory_space<vmem>>, %arg15: memref<22x128xf32, #tpu.memory_space<vmem>>) attributes {dimension_semantics = [#tpu.dimension_semantics<parallel>], iteration_bounds = array<i64: 1>, scalar_prefetch = 0 : i64, scratch_operands = 1 : i64, tpu.core_type = #tpu.core_type<tc>, window_params = [{transform_indices = @transform_0, window_bounds = array<i64: 2, 9, 128>}, {pipeline_mode = #tpu.pipeline_mode<synchronous>, transform_indices = @transform_1, window_bounds = array<i64: 128, 256>}, {pipeline_mode = #tpu.pipeline_mode<synchronous>, transform_indices = @transform_2, window_bounds = array<i64: 3, 128, 128>}, {pipeline_mode = #tpu.pipeline_mode<synchronous>, transform_indices = @transform_3, window_bounds = array<i64: 1, 128>}, {pipeline_mode = #tpu.pipeline_mode<synchronous>, transform_indices = @transform_4, window_bounds = array<i64: 3, 128, 128>}, {pipeline_mode = #tpu.pipeline_mode<synchronous>, transform_indices = @transform_5, window_bounds = array<i64: 1, 128>}, {pipeline_mode = #tpu.pipeline_mode<synchronous>, transform_indices = @transform_6, window_bounds = array<i64: 3, 128, 128>}, {pipeline_mode = #tpu.pipeline_mode<synchronous>, transform_indices = @transform_7, window_bounds = array<i64: 1, 128>}, {pipeline_mode = #tpu.pipeline_mode<synchronous>, transform_indices = @transform_8, window_bounds = array<i64: 3, 128, 128>}, {pipeline_mode = #tpu.pipeline_mode<synchronous>, transform_indices = @transform_9, window_bounds = array<i64: 1, 128>}, {transform_indices = @transform_10, window_bounds = array<i64: 2, 9, 128>}, {transform_indices = @transform_11, window_bounds = array<i64: 2, 9, 128>}, {transform_indices = @transform_12, window_bounds = array<i64: 2, 9, 128>}, {transform_indices = @transform_13, window_bounds = array<i64: 2, 9, 128>}]} {
    %cst = arith.constant 0.000000e+00 : f32
    %0 = vector.broadcast %cst : f32 to vector<22x128xf32>
    %c0 = arith.constant 0 : index
    %c0_0 = arith.constant 0 : index
    %1 = vector.load %arg15[%c0, %c0_0] : memref<22x128xf32, #tpu.memory_space<vmem>>, vector<22x128xf32>
    tpu.vector_store %arg15[%c0, %c0_0], %0 {strides = array<i32>} : memref<22x128xf32, #tpu.memory_space<vmem>>, vector<22x128xf32>,
    %c0_1 = arith.constant 0 : index
    %c0_2 = arith.constant 0 : index
    %2 = vector.load %arg2[%c0_1, %c0_2] : memref<128x256xf32, #tpu.memory_space<vmem>>, vector<128x256xf32>
    %c0_3 = arith.constant 0 : index
    %c0_4 = arith.constant 0 : index
    %c0_5 = arith.constant 0 : index
    %3 = vector.load %arg1[%c0_3, %c0_4, %c0_5] : memref<2x9x128xf32, #tpu.memory_space<vmem>>, vector<1x9x128xf32>
    %4 = vector.shape_cast %3 : vector<1x9x128xf32> to vector<9x128xf32>
    %cst_6 = arith.constant dense<0.000000e+00> : vector<9x256xf32>
    %5 = tpu.matmul %4, %2, %cst_6 {dimension_numbers = #tpu.dot_dimension_numbers<[1], [0], [0], [1], [0, 0, 1, 1], [], []>} : vector<9x128xf32>, vector<128x256xf32>, vector<9x256xf32> -> vector<9x256xf32>
    %6 = vector.extract_strided_slice %5 {offsets = [0, 0], sizes = [9, 128], strides = [1, 1]} : vector<9x256xf32> to vector<9x128xf32>
    %7 = vector.extract_strided_slice %5 {offsets = [0, 128], sizes = [9, 128], strides = [1, 1]} : vector<9x256xf32> to vector<9x128xf32>
    %8 = arith.mulf %6, %6 : vector<9x128xf32>
    %9 = arith.mulf %7, %7 : vector<9x128xf32>
    %10 = arith.addf %8, %9 : vector<9x128xf32>
    %11 = math.sqrt %10 : vector<9x128xf32>
    %c1 = arith.constant 1 : index
    %c0_7 = arith.constant 0 : index
    %12 = vector.load %arg15[%c1, %c0_7] : memref<22x128xf32, #tpu.memory_space<vmem>>, vector<9x128xf32>
    tpu.vector_store %arg15[%c1, %c0_7], %11 {strides = array<i32>} : memref<22x128xf32, #tpu.memory_space<vmem>>, vector<9x128xf32>,
    %c1_8 = arith.constant 1 : index
    %c0_9 = arith.constant 0 : index
    %c0_10 = arith.constant 0 : index
    %13 = vector.load %arg1[%c1_8, %c0_9, %c0_10] : memref<2x9x128xf32, #tpu.memory_space<vmem>>, vector<1x9x128xf32>
    %14 = vector.shape_cast %13 : vector<1x9x128xf32> to vector<9x128xf32>
    %cst_11 = arith.constant dense<0.000000e+00> : vector<9x256xf32>
    %15 = tpu.matmul %14, %2, %cst_11 {dimension_numbers = #tpu.dot_dimension_numbers<[1], [0], [0], [1], [0, 0, 1, 1], [], []>} : vector<9x128xf32>, vector<128x256xf32>, vector<9x256xf32> -> vector<9x256xf32>
    %16 = vector.extract_strided_slice %15 {offsets = [0, 0], sizes = [9, 128], strides = [1, 1]} : vector<9x256xf32> to vector<9x128xf32>
    %17 = vector.extract_strided_slice %15 {offsets = [0, 128], sizes = [9, 128], strides = [1, 1]} : vector<9x256xf32> to vector<9x128xf32>
    %18 = arith.mulf %16, %16 : vector<9x128xf32>
    %19 = arith.mulf %17, %17 : vector<9x128xf32>
    %20 = arith.addf %18, %19 : vector<9x128xf32>
    %21 = math.sqrt %20 : vector<9x128xf32>
    %c12 = arith.constant 12 : index
    %c0_12 = arith.constant 0 : index
    %22 = vector.load %arg15[%c12, %c0_12] : memref<22x128xf32, #tpu.memory_space<vmem>>, vector<9x128xf32>
    tpu.vector_store %arg15[%c12, %c0_12], %21 {strides = array<i32>} : memref<22x128xf32, #tpu.memory_space<vmem>>, vector<9x128xf32>,
    %c0_13 = arith.constant 0 : index
    %c0_14 = arith.constant 0 : index
    %23 = vector.load %arg15[%c0_13, %c0_14] : memref<22x128xf32, #tpu.memory_space<vmem>>, vector<22x128xf32>
    %24 = arith.truncf %23 : vector<22x128xf32> to vector<22x128xbf16>
    %25 = vector.extract_strided_slice %24 {offsets = [0, 0], sizes = [20, 128], strides = [1, 1]} : vector<22x128xbf16> to vector<20x128xbf16>
    %c0_15 = arith.constant 0 : index
    %c0_16 = arith.constant 0 : index
    %c0_17 = arith.constant 0 : index
    %26 = vector.load %arg3[%c0_15, %c0_16, %c0_17] : memref<3x128x128xbf16, #tpu.memory_space<vmem>>, vector<1x128x128xbf16>
    %27 = vector.shape_cast %26 : vector<1x128x128xbf16> to vector<128x128xbf16>
    %cst_18 = arith.constant dense<0.000000e+00> : vector<20x128xf32>
    %28 = tpu.matmul %25, %27, %cst_18 {dimension_numbers = #tpu.dot_dimension_numbers<[1], [0], [0], [1], [0, 0, 1, 1], [], []>} : vector<20x128xbf16>, vector<128x128xbf16>, vector<20x128xf32> -> vector<20x128xf32>
    %29 = vector.extract_strided_slice %24 {offsets = [1, 0], sizes = [20, 128], strides = [1, 1]} : vector<22x128xbf16> to vector<20x128xbf16>
    %c1_19 = arith.constant 1 : index
    %c0_20 = arith.constant 0 : index
    %c0_21 = arith.constant 0 : index
    %30 = vector.load %arg3[%c1_19, %c0_20, %c0_21] : memref<3x128x128xbf16, #tpu.memory_space<vmem>>, vector<1x128x128xbf16>
    %31 = vector.shape_cast %30 : vector<1x128x128xbf16> to vector<128x128xbf16>
    %cst_22 = arith.constant dense<0.000000e+00> : vector<20x128xf32>
    %32 = tpu.matmul %29, %31, %cst_22 {dimension_numbers = #tpu.dot_dimension_numbers<[1], [0], [0], [1], [0, 0, 1, 1], [], []>} : vector<20x128xbf16>, vector<128x128xbf16>, vector<20x128xf32> -> vector<20x128xf32>
    %33 = arith.addf %28, %32 : vector<20x128xf32>
    %34 = vector.extract_strided_slice %24 {offsets = [2, 0], sizes = [20, 128], strides = [1, 1]} : vector<22x128xbf16> to vector<20x128xbf16>
    %c2 = arith.constant 2 : index
    %c0_23 = arith.constant 0 : index
    %c0_24 = arith.constant 0 : index
    %35 = vector.load %arg3[%c2, %c0_23, %c0_24] : memref<3x128x128xbf16, #tpu.memory_space<vmem>>, vector<1x128x128xbf16>
    %36 = vector.shape_cast %35 : vector<1x128x128xbf16> to vector<128x128xbf16>
    %cst_25 = arith.constant dense<0.000000e+00> : vector<20x128xf32>
    %37 = tpu.matmul %34, %36, %cst_25 {dimension_numbers = #tpu.dot_dimension_numbers<[1], [0], [0], [1], [0, 0, 1, 1], [], []>} : vector<20x128xbf16>, vector<128x128xbf16>, vector<20x128xf32> -> vector<20x128xf32>
    %38 = arith.addf %33, %37 : vector<20x128xf32>
    %c0_26 = arith.constant 0 : index
    %c0_27 = arith.constant 0 : index
    %39 = vector.load %arg4[%c0_26, %c0_27] : memref<1x128xf32, #tpu.memory_space<vmem>>, vector<1x128xf32>
    %40 = vector.broadcast %39 : vector<1x128xf32> to vector<20x128xf32>
    %41 = arith.addf %38, %40 : vector<20x128xf32>
    %42 = vector.extract_strided_slice %41 {offsets = [0, 0], sizes = [9, 128], strides = [1, 1]} : vector<20x128xf32> to vector<9x128xf32>
    %c0_28 = arith.constant 0 : index
    %c0_29 = arith.constant 0 : index
    %c0_30 = arith.constant 0 : index
    %43 = vector.load %arg11[%c0_28, %c0_29, %c0_30] : memref<2x9x128xf32, #tpu.memory_space<vmem>>, vector<1x9x128xf32>
    %44 = vector.shape_cast %43 : vector<1x9x128xf32> to vector<9x128xf32>
    %45 = vector.shape_cast %42 : vector<9x128xf32> to vector<1x9x128xf32>
    tpu.vector_store %arg11[%c0_28, %c0_29, %c0_30], %45 {strides = array<i32>} : memref<2x9x128xf32, #tpu.memory_space<vmem>>, vector<1x9x128xf32>,
    %c1_31 = arith.constant 1 : index
    %c0_32 = arith.constant 0 : index
    %46 = vector.load %arg15[%c1_31, %c0_32] : memref<22x128xf32, #tpu.memory_space<vmem>>, vector<9x128xf32>
    tpu.vector_store %arg15[%c1_31, %c0_32], %42 {strides = array<i32>} : memref<22x128xf32, #tpu.memory_space<vmem>>, vector<9x128xf32>,
    %47 = vector.extract_strided_slice %41 {offsets = [11, 0], sizes = [9, 128], strides = [1, 1]} : vector<20x128xf32> to vector<9x128xf32>
    %c1_33 = arith.constant 1 : index
    %c0_34 = arith.constant 0 : index
    %c0_35 = arith.constant 0 : index
    %48 = vector.load %arg11[%c1_33, %c0_34, %c0_35] : memref<2x9x128xf32, #tpu.memory_space<vmem>>, vector<1x9x128xf32>
    %49 = vector.shape_cast %48 : vector<1x9x128xf32> to vector<9x128xf32>
    %50 = vector.shape_cast %47 : vector<9x128xf32> to vector<1x9x128xf32>
    tpu.vector_store %arg11[%c1_33, %c0_34, %c0_35], %50 {strides = array<i32>} : memref<2x9x128xf32, #tpu.memory_space<vmem>>, vector<1x9x128xf32>,
    %c12_36 = arith.constant 12 : index
    %c0_37 = arith.constant 0 : index
    %51 = vector.load %arg15[%c12_36, %c0_37] : memref<22x128xf32, #tpu.memory_space<vmem>>, vector<9x128xf32>
    tpu.vector_store %arg15[%c12_36, %c0_37], %47 {strides = array<i32>} : memref<22x128xf32, #tpu.memory_space<vmem>>, vector<9x128xf32>,
    %c0_38 = arith.constant 0 : index
    %c0_39 = arith.constant 0 : index
    %52 = vector.load %arg15[%c0_38, %c0_39] : memref<22x128xf32, #tpu.memory_space<vmem>>, vector<22x128xf32>
    %53 = arith.truncf %52 : vector<22x128xf32> to vector<22x128xbf16>
    %54 = vector.extract_strided_slice %53 {offsets = [0, 0], sizes = [20, 128], strides = [1, 1]} : vector<22x128xbf16> to vector<20x128xbf16>
    %c0_40 = arith.constant 0 : index
    %c0_41 = arith.constant 0 : index
    %c0_42 = arith.constant 0 : index
    %55 = vector.load %arg5[%c0_40, %c0_41, %c0_42] : memref<3x128x128xbf16, #tpu.memory_space<vmem>>, vector<1x128x128xbf16>
    %56 = vector.shape_cast %55 : vector<1x128x128xbf16> to vector<128x128xbf16>
    %cst_43 = arith.constant dense<0.000000e+00> : vector<20x128xf32>
    %57 = tpu.matmul %54, %56, %cst_43 {dimension_numbers = #tpu.dot_dimension_numbers<[1], [0], [0], [1], [0, 0, 1, 1], [], []>} : vector<20x128xbf16>, vector<128x128xbf16>, vector<20x128xf32> -> vector<20x128xf32>
    %58 = vector.extract_strided_slice %53 {offsets = [1, 0], sizes = [20, 128], strides = [1, 1]} : vector<22x128xbf16> to vector<20x128xbf16>
    %c1_44 = arith.constant 1 : index
    %c0_45 = arith.constant 0 : index
    %c0_46 = arith.constant 0 : index
    %59 = vector.load %arg5[%c1_44, %c0_45, %c0_46] : memref<3x128x128xbf16, #tpu.memory_space<vmem>>, vector<1x128x128xbf16>
    %60 = vector.shape_cast %59 : vector<1x128x128xbf16> to vector<128x128xbf16>
    %cst_47 = arith.constant dense<0.000000e+00> : vector<20x128xf32>
    %61 = tpu.matmul %58, %60, %cst_47 {dimension_numbers = #tpu.dot_dimension_numbers<[1], [0], [0], [1], [0, 0, 1, 1], [], []>} : vector<20x128xbf16>, vector<128x128xbf16>, vector<20x128xf32> -> vector<20x128xf32>
    %62 = arith.addf %57, %61 : vector<20x128xf32>
    %63 = vector.extract_strided_slice %53 {offsets = [2, 0], sizes = [20, 128], strides = [1, 1]} : vector<22x128xbf16> to vector<20x128xbf16>
    %c2_48 = arith.constant 2 : index
    %c0_49 = arith.constant 0 : index
    %c0_50 = arith.constant 0 : index
    %64 = vector.load %arg5[%c2_48, %c0_49, %c0_50] : memref<3x128x128xbf16, #tpu.memory_space<vmem>>, vector<1x128x128xbf16>
    %65 = vector.shape_cast %64 : vector<1x128x128xbf16> to vector<128x128xbf16>
    %cst_51 = arith.constant dense<0.000000e+00> : vector<20x128xf32>
    %66 = tpu.matmul %63, %65, %cst_51 {dimension_numbers = #tpu.dot_dimension_numbers<[1], [0], [0], [1], [0, 0, 1, 1], [], []>} : vector<20x128xbf16>, vector<128x128xbf16>, vector<20x128xf32> -> vector<20x128xf32>
    %67 = arith.addf %62, %66 : vector<20x128xf32>
    %c0_52 = arith.constant 0 : index
    %c0_53 = arith.constant 0 : index
    %68 = vector.load %arg6[%c0_52, %c0_53] : memref<1x128xf32, #tpu.memory_space<vmem>>, vector<1x128xf32>
    %69 = vector.broadcast %68 : vector<1x128xf32> to vector<20x128xf32>
    %70 = arith.addf %67, %69 : vector<20x128xf32>
    %71 = vector.extract_strided_slice %70 {offsets = [0, 0], sizes = [9, 128], strides = [1, 1]} : vector<20x128xf32> to vector<9x128xf32>
    %c0_54 = arith.constant 0 : index
    %c0_55 = arith.constant 0 : index
    %c0_56 = arith.constant 0 : index
    %72 = vector.load %arg12[%c0_54, %c0_55, %c0_56] : memref<2x9x128xf32, #tpu.memory_space<vmem>>, vector<1x9x128xf32>
    %73 = vector.shape_cast %72 : vector<1x9x128xf32> to vector<9x128xf32>
    %74 = vector.shape_cast %71 : vector<9x128xf32> to vector<1x9x128xf32>
    tpu.vector_store %arg12[%c0_54, %c0_55, %c0_56], %74 {strides = array<i32>} : memref<2x9x128xf32, #tpu.memory_space<vmem>>, vector<1x9x128xf32>,
    %c1_57 = arith.constant 1 : index
    %c0_58 = arith.constant 0 : index
    %75 = vector.load %arg15[%c1_57, %c0_58] : memref<22x128xf32, #tpu.memory_space<vmem>>, vector<9x128xf32>
    tpu.vector_store %arg15[%c1_57, %c0_58], %71 {strides = array<i32>} : memref<22x128xf32, #tpu.memory_space<vmem>>, vector<9x128xf32>,
    %76 = vector.extract_strided_slice %70 {offsets = [11, 0], sizes = [9, 128], strides = [1, 1]} : vector<20x128xf32> to vector<9x128xf32>
    %c1_59 = arith.constant 1 : index
    %c0_60 = arith.constant 0 : index
    %c0_61 = arith.constant 0 : index
    %77 = vector.load %arg12[%c1_59, %c0_60, %c0_61] : memref<2x9x128xf32, #tpu.memory_space<vmem>>, vector<1x9x128xf32>
    %78 = vector.shape_cast %77 : vector<1x9x128xf32> to vector<9x128xf32>
    %79 = vector.shape_cast %76 : vector<9x128xf32> to vector<1x9x128xf32>
    tpu.vector_store %arg12[%c1_59, %c0_60, %c0_61], %79 {strides = array<i32>} : memref<2x9x128xf32, #tpu.memory_space<vmem>>, vector<1x9x128xf32>,
    %c12_62 = arith.constant 12 : index
    %c0_63 = arith.constant 0 : index
    %80 = vector.load %arg15[%c12_62, %c0_63] : memref<22x128xf32, #tpu.memory_space<vmem>>, vector<9x128xf32>
    tpu.vector_store %arg15[%c12_62, %c0_63], %76 {strides = array<i32>} : memref<22x128xf32, #tpu.memory_space<vmem>>, vector<9x128xf32>,
    %c0_64 = arith.constant 0 : index
    %c0_65 = arith.constant 0 : index
    %81 = vector.load %arg15[%c0_64, %c0_65] : memref<22x128xf32, #tpu.memory_space<vmem>>, vector<22x128xf32>
    %82 = arith.truncf %81 : vector<22x128xf32> to vector<22x128xbf16>
    %83 = vector.extract_strided_slice %82 {offsets = [0, 0], sizes = [20, 128], strides = [1, 1]} : vector<22x128xbf16> to vector<20x128xbf16>
    %c0_66 = arith.constant 0 : index
    %c0_67 = arith.constant 0 : index
    %c0_68 = arith.constant 0 : index
    %84 = vector.load %arg7[%c0_66, %c0_67, %c0_68] : memref<3x128x128xbf16, #tpu.memory_space<vmem>>, vector<1x128x128xbf16>
    %85 = vector.shape_cast %84 : vector<1x128x128xbf16> to vector<128x128xbf16>
    %cst_69 = arith.constant dense<0.000000e+00> : vector<20x128xf32>
    %86 = tpu.matmul %83, %85, %cst_69 {dimension_numbers = #tpu.dot_dimension_numbers<[1], [0], [0], [1], [0, 0, 1, 1], [], []>} : vector<20x128xbf16>, vector<128x128xbf16>, vector<20x128xf32> -> vector<20x128xf32>
    %87 = vector.extract_strided_slice %82 {offsets = [1, 0], sizes = [20, 128], strides = [1, 1]} : vector<22x128xbf16> to vector<20x128xbf16>
    %c1_70 = arith.constant 1 : index
    %c0_71 = arith.constant 0 : index
    %c0_72 = arith.constant 0 : index
    %88 = vector.load %arg7[%c1_70, %c0_71, %c0_72] : memref<3x128x128xbf16, #tpu.memory_space<vmem>>, vector<1x128x128xbf16>
    %89 = vector.shape_cast %88 : vector<1x128x128xbf16> to vector<128x128xbf16>
    %cst_73 = arith.constant dense<0.000000e+00> : vector<20x128xf32>
    %90 = tpu.matmul %87, %89, %cst_73 {dimension_numbers = #tpu.dot_dimension_numbers<[1], [0], [0], [1], [0, 0, 1, 1], [], []>} : vector<20x128xbf16>, vector<128x128xbf16>, vector<20x128xf32> -> vector<20x128xf32>
    %91 = arith.addf %86, %90 : vector<20x128xf32>
    %92 = vector.extract_strided_slice %82 {offsets = [2, 0], sizes = [20, 128], strides = [1, 1]} : vector<22x128xbf16> to vector<20x128xbf16>
    %c2_74 = arith.constant 2 : index
    %c0_75 = arith.constant 0 : index
    %c0_76 = arith.constant 0 : index
    %93 = vector.load %arg7[%c2_74, %c0_75, %c0_76] : memref<3x128x128xbf16, #tpu.memory_space<vmem>>, vector<1x128x128xbf16>
    %94 = vector.shape_cast %93 : vector<1x128x128xbf16> to vector<128x128xbf16>
    %cst_77 = arith.constant dense<0.000000e+00> : vector<20x128xf32>
    %95 = tpu.matmul %92, %94, %cst_77 {dimension_numbers = #tpu.dot_dimension_numbers<[1], [0], [0], [1], [0, 0, 1, 1], [], []>} : vector<20x128xbf16>, vector<128x128xbf16>, vector<20x128xf32> -> vector<20x128xf32>
    %96 = arith.addf %91, %95 : vector<20x128xf32>
    %c0_78 = arith.constant 0 : index
    %c0_79 = arith.constant 0 : index
    %97 = vector.load %arg8[%c0_78, %c0_79] : memref<1x128xf32, #tpu.memory_space<vmem>>, vector<1x128xf32>
    %98 = vector.broadcast %97 : vector<1x128xf32> to vector<20x128xf32>
    %99 = arith.addf %96, %98 : vector<20x128xf32>
    %100 = vector.extract_strided_slice %99 {offsets = [0, 0], sizes = [9, 128], strides = [1, 1]} : vector<20x128xf32> to vector<9x128xf32>
    %c0_80 = arith.constant 0 : index
    %c0_81 = arith.constant 0 : index
    %c0_82 = arith.constant 0 : index
    %101 = vector.load %arg13[%c0_80, %c0_81, %c0_82] : memref<2x9x128xf32, #tpu.memory_space<vmem>>, vector<1x9x128xf32>
    %102 = vector.shape_cast %101 : vector<1x9x128xf32> to vector<9x128xf32>
    %103 = vector.shape_cast %100 : vector<9x128xf32> to vector<1x9x128xf32>
    tpu.vector_store %arg13[%c0_80, %c0_81, %c0_82], %103 {strides = array<i32>} : memref<2x9x128xf32, #tpu.memory_space<vmem>>, vector<1x9x128xf32>,
    %c1_83 = arith.constant 1 : index
    %c0_84 = arith.constant 0 : index
    %104 = vector.load %arg15[%c1_83, %c0_84] : memref<22x128xf32, #tpu.memory_space<vmem>>, vector<9x128xf32>
    tpu.vector_store %arg15[%c1_83, %c0_84], %100 {strides = array<i32>} : memref<22x128xf32, #tpu.memory_space<vmem>>, vector<9x128xf32>,
    %105 = vector.extract_strided_slice %99 {offsets = [11, 0], sizes = [9, 128], strides = [1, 1]} : vector<20x128xf32> to vector<9x128xf32>
    %c1_85 = arith.constant 1 : index
    %c0_86 = arith.constant 0 : index
    %c0_87 = arith.constant 0 : index
    %106 = vector.load %arg13[%c1_85, %c0_86, %c0_87] : memref<2x9x128xf32, #tpu.memory_space<vmem>>, vector<1x9x128xf32>
    %107 = vector.shape_cast %106 : vector<1x9x128xf32> to vector<9x128xf32>
    %108 = vector.shape_cast %105 : vector<9x128xf32> to vector<1x9x128xf32>
    tpu.vector_store %arg13[%c1_85, %c0_86, %c0_87], %108 {strides = array<i32>} : memref<2x9x128xf32, #tpu.memory_space<vmem>>, vector<1x9x128xf32>,
    %c12_88 = arith.constant 12 : index
    %c0_89 = arith.constant 0 : index
    %109 = vector.load %arg15[%c12_88, %c0_89] : memref<22x128xf32, #tpu.memory_space<vmem>>, vector<9x128xf32>
    tpu.vector_store %arg15[%c12_88, %c0_89], %105 {strides = array<i32>} : memref<22x128xf32, #tpu.memory_space<vmem>>, vector<9x128xf32>,
    %c0_90 = arith.constant 0 : index
    %c0_91 = arith.constant 0 : index
    %110 = vector.load %arg15[%c0_90, %c0_91] : memref<22x128xf32, #tpu.memory_space<vmem>>, vector<22x128xf32>
    %111 = arith.truncf %110 : vector<22x128xf32> to vector<22x128xbf16>
    %112 = vector.extract_strided_slice %111 {offsets = [0, 0], sizes = [20, 128], strides = [1, 1]} : vector<22x128xbf16> to vector<20x128xbf16>
    %c0_92 = arith.constant 0 : index
    %c0_93 = arith.constant 0 : index
    %c0_94 = arith.constant 0 : index
    %113 = vector.load %arg9[%c0_92, %c0_93, %c0_94] : memref<3x128x128xbf16, #tpu.memory_space<vmem>>, vector<1x128x128xbf16>
    %114 = vector.shape_cast %113 : vector<1x128x128xbf16> to vector<128x128xbf16>
    %cst_95 = arith.constant dense<0.000000e+00> : vector<20x128xf32>
    %115 = tpu.matmul %112, %114, %cst_95 {dimension_numbers = #tpu.dot_dimension_numbers<[1], [0], [0], [1], [0, 0, 1, 1], [], []>} : vector<20x128xbf16>, vector<128x128xbf16>, vector<20x128xf32> -> vector<20x128xf32>
    %116 = vector.extract_strided_slice %111 {offsets = [1, 0], sizes = [20, 128], strides = [1, 1]} : vector<22x128xbf16> to vector<20x128xbf16>
    %c1_96 = arith.constant 1 : index
    %c0_97 = arith.constant 0 : index
    %c0_98 = arith.constant 0 : index
    %117 = vector.load %arg9[%c1_96, %c0_97, %c0_98] : memref<3x128x128xbf16, #tpu.memory_space<vmem>>, vector<1x128x128xbf16>
    %118 = vector.shape_cast %117 : vector<1x128x128xbf16> to vector<128x128xbf16>
    %cst_99 = arith.constant dense<0.000000e+00> : vector<20x128xf32>
    %119 = tpu.matmul %116, %118, %cst_99 {dimension_numbers = #tpu.dot_dimension_numbers<[1], [0], [0], [1], [0, 0, 1, 1], [], []>} : vector<20x128xbf16>, vector<128x128xbf16>, vector<20x128xf32> -> vector<20x128xf32>
    %120 = arith.addf %115, %119 : vector<20x128xf32>
    %121 = vector.extract_strided_slice %111 {offsets = [2, 0], sizes = [20, 128], strides = [1, 1]} : vector<22x128xbf16> to vector<20x128xbf16>
    %c2_100 = arith.constant 2 : index
    %c0_101 = arith.constant 0 : index
    %c0_102 = arith.constant 0 : index
    %122 = vector.load %arg9[%c2_100, %c0_101, %c0_102] : memref<3x128x128xbf16, #tpu.memory_space<vmem>>, vector<1x128x128xbf16>
    %123 = vector.shape_cast %122 : vector<1x128x128xbf16> to vector<128x128xbf16>
    %cst_103 = arith.constant dense<0.000000e+00> : vector<20x128xf32>
    %124 = tpu.matmul %121, %123, %cst_103 {dimension_numbers = #tpu.dot_dimension_numbers<[1], [0], [0], [1], [0, 0, 1, 1], [], []>} : vector<20x128xbf16>, vector<128x128xbf16>, vector<20x128xf32> -> vector<20x128xf32>
    %125 = arith.addf %120, %124 : vector<20x128xf32>
    %c0_104 = arith.constant 0 : index
    %c0_105 = arith.constant 0 : index
    %126 = vector.load %arg10[%c0_104, %c0_105] : memref<1x128xf32, #tpu.memory_space<vmem>>, vector<1x128xf32>
    %127 = vector.broadcast %126 : vector<1x128xf32> to vector<20x128xf32>
    %128 = arith.addf %125, %127 : vector<20x128xf32>
    %129 = vector.extract_strided_slice %128 {offsets = [0, 0], sizes = [9, 128], strides = [1, 1]} : vector<20x128xf32> to vector<9x128xf32>
    %c0_106 = arith.constant 0 : index
    %c0_107 = arith.constant 0 : index
    %c0_108 = arith.constant 0 : index
    %130 = vector.load %arg14[%c0_106, %c0_107, %c0_108] : memref<2x9x128xf32, #tpu.memory_space<vmem>>, vector<1x9x128xf32>
    %131 = vector.shape_cast %130 : vector<1x9x128xf32> to vector<9x128xf32>
    %132 = vector.shape_cast %129 : vector<9x128xf32> to vector<1x9x128xf32>
    tpu.vector_store %arg14[%c0_106, %c0_107, %c0_108], %132 {strides = array<i32>} : memref<2x9x128xf32, #tpu.memory_space<vmem>>, vector<1x9x128xf32>,
    %133 = vector.extract_strided_slice %128 {offsets = [11, 0], sizes = [9, 128], strides = [1, 1]} : vector<20x128xf32> to vector<9x128xf32>
    %c1_109 = arith.constant 1 : index
    %c0_110 = arith.constant 0 : index
    %c0_111 = arith.constant 0 : index
    %134 = vector.load %arg14[%c1_109, %c0_110, %c0_111] : memref<2x9x128xf32, #tpu.memory_space<vmem>>, vector<1x9x128xf32>
    %135 = vector.shape_cast %134 : vector<1x9x128xf32> to vector<9x128xf32>
    %136 = vector.shape_cast %133 : vector<9x128xf32> to vector<1x9x128xf32>
    tpu.vector_store %arg14[%c1_109, %c0_110, %c0_111], %136 {strides = array<i32>} : memref<2x9x128xf32, #tpu.memory_space<vmem>>, vector<1x9x128xf32>,
    return
  }
  func.func @transform_0(%arg0: i32) -> (i32, i32, i32) {
    %c0_i32 = arith.constant 0 : i32
    %c0_i32_0 = arith.constant 0 : i32
    %c0_i32_1 = arith.constant 0 : i32
    return %arg0, %c0_i32, %c0_i32_0 : i32, i32, i32
  }
  func.func @transform_1(%arg0: i32) -> (i32, i32) {
    %c0_i32 = arith.constant 0 : i32
    %c0_i32_0 = arith.constant 0 : i32
    %c0_i32_1 = arith.constant 0 : i32
    return %c0_i32, %c0_i32_0 : i32, i32
  }
  func.func @transform_2(%arg0: i32) -> (i32, i32, i32) {
    %c0_i32 = arith.constant 0 : i32
    %c0_i32_0 = arith.constant 0 : i32
    %c0_i32_1 = arith.constant 0 : i32
    %c0_i32_2 = arith.constant 0 : i32
    return %c0_i32, %c0_i32_0, %c0_i32_1 : i32, i32, i32
  }
  func.func @transform_3(%arg0: i32) -> (i32, i32) {
    %c0_i32 = arith.constant 0 : i32
    %c0_i32_0 = arith.constant 0 : i32
    %c0_i32_1 = arith.constant 0 : i32
    return %c0_i32, %c0_i32_0 : i32, i32
  }
  func.func @transform_4(%arg0: i32) -> (i32, i32, i32) {
    %c0_i32 = arith.constant 0 : i32
    %c0_i32_0 = arith.constant 0 : i32
    %c0_i32_1 = arith.constant 0 : i32
    %c0_i32_2 = arith.constant 0 : i32
    return %c0_i32, %c0_i32_0, %c0_i32_1 : i32, i32, i32
  }
  func.func @transform_5(%arg0: i32) -> (i32, i32) {
    %c0_i32 = arith.constant 0 : i32
    %c0_i32_0 = arith.constant 0 : i32
    %c0_i32_1 = arith.constant 0 : i32
    return %c0_i32, %c0_i32_0 : i32, i32
  }
  func.func @transform_6(%arg0: i32) -> (i32, i32, i32) {
    %c0_i32 = arith.constant 0 : i32
    %c0_i32_0 = arith.constant 0 : i32
    %c0_i32_1 = arith.constant 0 : i32
    %c0_i32_2 = arith.constant 0 : i32
    return %c0_i32, %c0_i32_0, %c0_i32_1 : i32, i32, i32
  }
  func.func @transform_7(%arg0: i32) -> (i32, i32) {
    %c0_i32 = arith.constant 0 : i32
    %c0_i32_0 = arith.constant 0 : i32
    %c0_i32_1 = arith.constant 0 : i32
    return %c0_i32, %c0_i32_0 : i32, i32
  }
  func.func @transform_8(%arg0: i32) -> (i32, i32, i32) {
    %c0_i32 = arith.constant 0 : i32
    %c0_i32_0 = arith.constant 0 : i32
    %c0_i32_1 = arith.constant 0 : i32
    %c0_i32_2 = arith.constant 0 : i32
    return %c0_i32, %c0_i32_0, %c0_i32_1 : i32, i32, i32
  }
  func.func @transform_9(%arg0: i32) -> (i32, i32) {
    %c0_i32 = arith.constant 0 : i32
    %c0_i32_0 = arith.constant 0 : i32
    %c0_i32_1 = arith.constant 0 : i32
    return %c0_i32, %c0_i32_0 : i32, i32
  }
  func.func @transform_10(%arg0: i32) -> (i32, i32, i32) {
    %c0_i32 = arith.constant 0 : i32
    %c0_i32_0 = arith.constant 0 : i32
    %c0_i32_1 = arith.constant 0 : i32
    return %arg0, %c0_i32, %c0_i32_0 : i32, i32, i32
  }
  func.func @transform_11(%arg0: i32) -> (i32, i32, i32) {
    %c0_i32 = arith.constant 0 : i32
    %c0_i32_0 = arith.constant 0 : i32
    %c0_i32_1 = arith.constant 0 : i32
    return %arg0, %c0_i32, %c0_i32_0 : i32, i32, i32
  }
  func.func @transform_12(%arg0: i32) -> (i32, i32, i32) {
    %c0_i32 = arith.constant 0 : i32
    %c0_i32_0 = arith.constant 0 : i32
    %c0_i32_1 = arith.constant 0 : i32
    return %arg0, %c0_i32, %c0_i32_0 : i32, i32, i32
  }
  func.func @transform_13(%arg0: i32) -> (i32, i32, i32) {
    %c0_i32 = arith.constant 0 : i32
    %c0_i32_0 = arith.constant 0 : i32
    %c0_i32_1 = arith.constant 0 : i32
    return %arg0, %c0_i32, %c0_i32_0 : i32, i32, i32
  }
}

</mosaic_0001>

<bundles_post_ra>
// kernel: forward.1
= control target key start
LH: loop header
LB: loop body
LE: loop exit
PB: predicated region body
PF: predicated region fallthrough
CT: control target
= control target key end

     0   :  { %v2615_v3 = vmov 0.0   ;;  %vm316_vm8 = vsmask.f32 7424  ;;  %vm545_vm9 = vcmask 1046528   ;;  %s3161_s1 = inlined_call_operand.vmem [shape: f32[128,256], index: 1, kind: input, shape index: {}]   ;;  %s3162_s0 = inlined_call_operand.vmem [shape: f32[2,9,128], index: 0, kind: input, shape index: {}]   ;;  %s3163_s2 = inlined_call_operand.vmem [shape: bf16[3,128,128], index: 2, kind: input, shape index: {}]   ;;  %s3164_s4 = inlined_call_operand.vmem [shape: bf16[3,128,128], index: 4, kind: input, shape index: {}]   ;;  %s3165_s3 = inlined_call_operand.vmem [shape: f32[1,128], index: 3, kind: input, shape index: {}]   ;;  %s3166_s10 = inlined_call_operand.vmem [shape: f32[2,9,128], index: 10, kind: output, shape index: {0}]   ;;  %s3167_s6 = inlined_call_operand.vmem [shape: bf16[3,128,128], index: 6, kind: input, shape index: {}]   ;;  %s3168_s5 = inlined_call_operand.vmem [shape: f32[1,128], index: 5, kind: input, shape index: {}]   ;;  %s3169_s11 = inlined_call_operand.vmem [shape: f32[2,9,128], index: 11, kind: output, shape index: {1}]   ;;  %s3170_s8 = inlined_call_operand.vmem [shape: bf16[3,128,128], index: 8, kind: input, shape index: {}]   ;;  %s3171_s7 = inlined_call_operand.vmem [shape: f32[1,128], index: 7, kind: input, shape index: {}]   ;;  %s3172_s12 = inlined_call_operand.vmem [shape: f32[2,9,128], index: 12, kind: output, shape index: {2}]   ;;  %s3173_s9 = inlined_call_operand.vmem [shape: f32[1,128], index: 9, kind: input, shape index: {}]   ;;  %s3174_s13 = inlined_call_operand.vmem [shape: f32[2,9,128], index: 13, kind: output, shape index: {3}]  }
   0x1   :  { %v44_v0 = vld [vmem:[%s3161_s1 + $0x8] sm:$0xff]  ;;  %v46_v1 = vld [vmem:[%s3161_s1 + $0x18] sm:$0xff]  ;;  %v43_v2 = vld [vmem:[%s3161_s1] sm:$0xff]  ;;  %40 = vst [vmem:[#allocation2] sm:$0xff] %v2615_v3  ;;  %141 = vmatprep.mubr.f32.mxu0 %v2615_v3  ;;  %243 = vmatprep.mubr.f32.mxu1 %v2615_v3 }
   0x2   :  { %41 = vst [vmem:[#allocation2 + $0x8] sm:$0xff] %v2615_v3  ;;  %42 = vst [vmem:[#allocation2 + $0x10] sm:$0x3f] %v2615_v3  ;;  %v2446_v4 = vpack.c.bf16 %v46_v1, %v44_v0  ;;  %v45_v5 = vld [vmem:[%s3161_s1 + $0x10] sm:$0xff]  ;;  %v48_v6 = vld [vmem:[%s3161_s1 + $0x28] sm:$0xff] }
   0x3   :  { %v50_v7 = vld [vmem:[%s3161_s1 + $0x38] sm:$0xff]  ;;  %v2448_v8 = vpack.c.bf16 %v45_v5, %v43_v2  ;;  %v47_v10 = vld [vmem:[%s3161_s1 + $0x20] sm:$0xff]  ;;  %v49_v11 = vld [vmem:[%s3161_s1 + $0x30] sm:$0xff] }
   0x4   :  { %v2450_v9 = vpack.c.bf16 %v50_v7, %v48_v6  ;;  %v52_v12 = vld [vmem:[%s3161_s1 + $0x48] sm:$0xff]  ;;  %2447 = vmatprep.subr.bf16.mxu0 %v2446_v4  ;;  %2479 = vmatprep.subr.bf16.mxu1 %v2446_v4  ;;  %v54_v13 = vld [vmem:[%s3161_s1 + $0x58] sm:$0xff]  ;;  %v2452_v14 = vpack.c.bf16 %v49_v11, %v47_v10  ;;  %v51_v16 = vld [vmem:[%s3161_s1 + $0x40] sm:$0xff] }
   0x5   :  { %2449 = vmatpush1.bf16.msra.mxu0 %v2448_v8  ;;  %2481 = vmatpush1.bf16.msra.mxu1 %v2448_v8  ;;  %v2454_v15 = vpack.c.bf16 %v54_v13, %v52_v12  ;;  %v53_v17 = vld [vmem:[%s3161_s1 + $0x50] sm:$0xff]  ;;  %v56_v18 = vld [vmem:[%s3161_s1 + $0x68] sm:$0xff]  ;;  %v58_v19 = vld [vmem:[%s3161_s1 + $0x78] sm:$0xff] }
   0x6   :  { %2451 = vmatprep.subr.bf16.mxu0 %v2450_v9  ;;  %2483 = vmatprep.subr.bf16.mxu1 %v2450_v9  ;;  %v2456_v20 = vpack.c.bf16 %v53_v17, %v51_v16  ;;  %v2458_v21 = vpack.c.bf16 %v58_v19, %v56_v18  ;;  %v55_v22 = vld [vmem:[%s3161_s1 + $0x60] sm:$0xff]  ;;  %v57_v23 = vld [vmem:[%s3161_s1 + $0x70] sm:$0xff]  ;;  %v60_v24 = vld [vmem:[%s3161_s1 + $0x88] sm:$0xff] }
   0x7   :  { %v62_v25 = vld [vmem:[%s3161_s1 + $0x98] sm:$0xff]  ;;  %v2460_v26 = vpack.c.bf16 %v57_v23, %v55_v22  ;;  %v59_v28 = vld [vmem:[%s3161_s1 + $0x80] sm:$0xff]  ;;  %v61_v29 = vld [vmem:[%s3161_s1 + $0x90] sm:$0xff] }
   0x8   :  { %v2462_v27 = vpack.c.bf16 %v62_v25, %v60_v24  ;;  %v64_v30 = vld [vmem:[%s3161_s1 + $0xa8] sm:$0xff]  ;;  %v66_v31 = vld [vmem:[%s3161_s1 + $0xb8] sm:$0xff]  ;;  %v2464_v32 = vpack.c.bf16 %v61_v29, %v59_v28  ;;  %v63_v34 = vld [vmem:[%s3161_s1 + $0xa0] sm:$0xff] }
   0x9   :  { %2453 = vmatpush1.bf16.msra.mxu0 %v2452_v14  ;;  %2485 = vmatpush1.bf16.msra.mxu1 %v2452_v14  ;;  %v2466_v33 = vpack.c.bf16 %v66_v31, %v64_v30  ;;  %v65_v35 = vld [vmem:[%s3161_s1 + $0xb0] sm:$0xff]  ;;  %v68_v36 = vld [vmem:[%s3161_s1 + $0xc8] sm:$0xff]  ;;  %v70_v37 = vld [vmem:[%s3161_s1 + $0xd8] sm:$0xff] }
   0xa   :  { %2455 = vmatprep.subr.bf16.mxu0 %v2454_v15  ;;  %2487 = vmatprep.subr.bf16.mxu1 %v2454_v15  ;;  %v2468_v38 = vpack.c.bf16 %v65_v35, %v63_v34  ;;  %v2470_v39 = vpack.c.bf16 %v70_v37, %v68_v36  ;;  %v67_v40 = vld [vmem:[%s3161_s1 + $0xc0] sm:$0xff]  ;;  %v69_v41 = vld [vmem:[%s3161_s1 + $0xd0] sm:$0xff]  ;;  %v72_v42 = vld [vmem:[%s3161_s1 + $0xe8] sm:$0xff] }
   0xb   :  { %v74_v43 = vld [vmem:[%s3161_s1 + $0xf8] sm:$0xff]  ;;  %v2472_v44 = vpack.c.bf16 %v69_v41, %v67_v40  ;;  %v71_v46 = vld [vmem:[%s3161_s1 + $0xe0] sm:$0xff]  ;;  %v73_v47 = vld [vmem:[%s3161_s1 + $0xf0] sm:$0xff] }
   0xc   :  { %v2474_v45 = vpack.c.bf16 %v74_v43, %v72_v42  ;;  %v2476_v48 = vpack.c.bf16 %v73_v47, %v71_v46  ;;  %v75_v49 = vld [vmem:[%s3162_s0] sm:$0xff]  ;;  %v1848_v50 = vld [vmem:[%s3162_s0 + $0x10] sm:$0xff]  ;;  %v76_v51 = vld [vmem:[%s3162_s0 + $0x8] sm:$0x1] }
   0xd   :  { %2457 = vmatpush1.bf16.msra.mxu0 %v2456_v20  ;;  %2489 = vmatpush1.bf16.msra.mxu1 %v2456_v20  ;;  %v1849_v52 = vld [vmem:[%s3162_s0 + $0x18] sm:$0x1]  ;;  %v2511_v53 = vld [vmem:[%s3163_s2] sm:$0xff]   ;;  %v2512_v54 = vld [vmem:[%s3163_s2 + $0x8] sm:$0xff]  }
   0xe   :  { %2459 = vmatprep.subr.bf16.mxu0 %v2458_v21  ;;  %2491 = vmatprep.subr.bf16.mxu1 %v2458_v21  ;;  %v2513_v55 = vld [vmem:[%s3163_s2 + $0x40] sm:$0xff]   ;;  %v2514_v56 = vld [vmem:[%s3163_s2 + $0x10] sm:$0xff]   ;;  %v2515_v57 = vld [vmem:[%s3163_s2 + $0x48] sm:$0xff]  }
   0xf   :  { %v2516_v58 = vld [vmem:[%s3163_s2 + $0x18] sm:$0xff]   ;;  %v2517_v59 = vld [vmem:[%s3163_s2 + $0x50] sm:$0xff]   ;;  %v2518_v60 = vld [vmem:[%s3163_s2 + $0x20] sm:$0xff]  }
  0x10   :  { %v2519_v61 = vld [vmem:[%s3163_s2 + $0x58] sm:$0xff]   ;;  %v2520_v62 = vld [vmem:[%s3163_s2 + $0x28] sm:$0xff]   ;;  %v2521_v63 = vld [vmem:[%s3163_s2 + $0x60] sm:$0xff]  }
  0x11   :  { %2461 = vmatpush1.bf16.msra.mxu0 %v2460_v26  ;;  %2493 = vmatpush1.bf16.msra.mxu1 %v2460_v26  ;;  %v2522_v0 = vld [vmem:[%s3163_s2 + $0x30] sm:$0xff]   ;;  %v2523_v1 = vld [vmem:[%s3163_s2 + $0x68] sm:$0xff]   ;;  %v2524_v2 = vld [vmem:[%s3163_s2 + $0x38] sm:$0xff]  }
  0x12   :  { %2463 = vmatprep.subr.bf16.mxu0 %v2462_v27  ;;  %2495 = vmatprep.subr.bf16.mxu1 %v2462_v27  ;;  %v2526_v4 = vld [vmem:[%s3163_s2 + $0x78] sm:$0xff]   ;;  %v2852_v5 = vld [vmem:[%s3163_s2 + $0x80] sm:$0xff]  }
  0x15   :  { %2465 = vmatpush1.bf16.msra.mxu0 %v2464_v32  ;;  %2497 = vmatpush1.bf16.msra.mxu1 %v2464_v32 }
  0x16   :  { %2467 = vmatprep.subr.bf16.mxu0 %v2466_v33  ;;  %2499 = vmatprep.subr.bf16.mxu1 %v2466_v33 }
  0x19   :  { %2469 = vmatpush1.bf16.msra.mxu0 %v2468_v38  ;;  %2501 = vmatpush1.bf16.msra.mxu1 %v2468_v38 }
  0x1a   :  { %2471 = vmatprep.subr.bf16.mxu0 %v2470_v39  ;;  %2503 = vmatprep.subr.bf16.mxu1 %v2470_v39 }
  0x1d   :  { %2473 = vmatpush1.bf16.msra.mxu0 %v2472_v44  ;;  %2505 = vmatpush1.bf16.msra.mxu1 %v2472_v44 }
  0x1e   :  { %2475 = vmatprep.subr.bf16.mxu0 %v2474_v45  ;;  %2507 = vmatprep.subr.bf16.mxu1 %v2474_v45 }
  0x21   :  { %2477 = vmatpush1.bf16.msra.mxu0 %v2476_v48  ;;  %2509 = vmatpush1.bf16.msra.mxu1 %v2476_v48 }
  0x22   :  { %2226 = vmatprep.subr.bf16.mxu1 %v2511_v53  ;;  %2206 = vmatprep.subr.bf16.mxu0 %v2513_v55 }
  0x24   :  { %142 = vmatmul.mubr.f32.vlgmr.msra.gmra.mrb[0].mxu0 %v75_v49  ;;  %244 = vmatmul.mubr.f32.vlgmr.msra.gmra.mrb[0].mxu1 %v1848_v50 }
  0x25   :  { %147 = vmatprep.mubr.f32.mxu0 %v2615_v3  ;;  %249 = vmatprep.mubr.f32.mxu1 %v2615_v3  ;;  %v2525_v3 = vld [vmem:[%s3163_s2 + $0x70] sm:$0xff]  }
  0x26   :  { %2227 = vmatpush3.bf16.msra.mxu1 %v2511_v53  ;;  %2207 = vmatpush3.bf16.msra.mxu0 %v2513_v55 }
  0x27   :  { %2228 = vmatprep.subr.bf16.mxu1 %v2512_v54  ;;  %2208 = vmatprep.subr.bf16.mxu0 %v2515_v57 }
  0x28   :  { %148 = vmatmul.mubr.f32.gmra.mrb[2].mxu0 %v76_v51  ;;  %250 = vmatmul.mubr.f32.gmra.mrb[2].mxu1 %v1849_v52 }
  0x2a   :  { %2229 = vmatpush3.bf16.msra.mxu1 %v2512_v54  ;;  %2209 = vmatpush3.bf16.msra.mxu0 %v2515_v57 }
  0x2b   :  { %2230 = vmatprep.subr.bf16.mxu1 %v2514_v56  ;;  %2210 = vmatprep.subr.bf16.mxu0 %v2517_v59 }
  0x2e   :  { %2231 = vmatpush3.bf16.msra.mxu1 %v2514_v56  ;;  %2211 = vmatpush3.bf16.msra.mxu0 %v2517_v59 }
  0x2f   :  { %2232 = vmatprep.subr.bf16.mxu1 %v2516_v58  ;;  %2212 = vmatprep.subr.bf16.mxu0 %v2519_v61 }
  0x32   :  { %2233 = vmatpush3.bf16.msra.mxu1 %v2516_v58  ;;  %2213 = vmatpush3.bf16.msra.mxu0 %v2519_v61 }
  0x33   :  { %2234 = vmatprep.subr.bf16.mxu1 %v2518_v60  ;;  %2214 = vmatprep.subr.bf16.mxu0 %v2521_v63 }
  0x36   :  { %2235 = vmatpush3.bf16.msra.mxu1 %v2518_v60  ;;  %2215 = vmatpush3.bf16.msra.mxu0 %v2521_v63 }
  0x37   :  { %2236 = vmatprep.subr.bf16.mxu1 %v2520_v62  ;;  %2216 = vmatprep.subr.bf16.mxu0 %v2523_v1 }
  0x3a   :  { %2237 = vmatpush3.bf16.msra.mxu1 %v2520_v62  ;;  %2217 = vmatpush3.bf16.msra.mxu0 %v2523_v1  ;;  %v2528_v62 = vld [vmem:[%s3163_s2 + $0x88] sm:$0xff]   ;;  %v2530_v1 = vld [vmem:[%s3163_s2 + $0x98] sm:$0xff]  }
  0x3b   :  { %2238 = vmatprep.subr.bf16.mxu1 %v2522_v0  ;;  %2218 = vmatprep.subr.bf16.mxu0 %v2525_v3 }
  0x3e   :  { %2239 = vmatpush3.bf16.msra.mxu1 %v2522_v0  ;;  %2219 = vmatpush3.bf16.msra.mxu0 %v2525_v3  ;;  %v2529_v0 = vld [vmem:[%s3163_s2 + $0x90] sm:$0xff]   ;;  %v2532_v3 = vld [vmem:[%s3163_s2 + $0xa8] sm:$0xff]  }
  0x3f   :  { %2240 = vmatprep.subr.bf16.mxu1 %v2524_v2  ;;  %2220 = vmatprep.subr.bf16.mxu0 %v2526_v4 }
  0x42   :  { %2241 = vmatpush3.bf16.msra.mxu1 %v2524_v2  ;;  %2221 = vmatpush3.bf16.msra.mxu0 %v2526_v4  ;;  %v2531_v2 = vld [vmem:[%s3163_s2 + $0xa0] sm:$0xff]   ;;  %v2533_v4 = vld [vmem:[%s3163_s2 + $0xb0] sm:$0xff]  }
  0x43   :  { %2246 = vmatprep.subr.bf16.mxu0 %v2852_v5 }
  0xf7   :  { %v143_v6 = vpop.f32.mrb[0].mxu0  ;;  %v245_v7 = vpop.f32.mrb[0].mxu1 }
  0xf8   :  { %v154_v8 = vmul.f32 %v143_v6, %v143_v6  ;;  %v256_v9 = vmul.f32 %v245_v7, %v245_v7  ;;  %v145_v10 = vpop.f32.mrb[1].mxu0  ;;  %v247_v11 = vpop.f32.mrb[1].mxu1  ;;  %v2535_v6 = vld [vmem:[%s3164_s4] sm:$0xff]   ;;  %v2536_v7 = vld [vmem:[%s3164_s4 + $0x8] sm:$0xff]  }
  0xf9   :  { %v156_v12 = vmul.f32 %v145_v10, %v145_v10  ;;  %v258_v13 = vmul.f32 %v247_v11, %v247_v11  ;;  %v2539_v10 = vld [vmem:[%s3164_s4 + $0x48] sm:$0xff]   ;;  %v2540_v11 = vld [vmem:[%s3164_s4 + $0x18] sm:$0xff]  }
  0xfb   :  { %v158_v14 = vadd.f32 %v156_v12, %v154_v8  ;;  %v260_v15 = vadd.f32 %v258_v13, %v256_v9  ;;  %v149_v16 = vpop.f32.mrb[2].mxu0  ;;  %v251_v17 = vpop.f32.mrb[2].mxu1  ;;  %v2537_v8 = vld [vmem:[%s3164_s4 + $0x40] sm:$0xff]   ;;  %v2538_v9 = vld [vmem:[%s3164_s4 + $0x10] sm:$0xff]  }
  0xfc   :  { %v151_v18 = vpop.f32.mrb[3].mxu0  ;;  %v253_v19 = vpop.f32.mrb[3].mxu1  ;;  %v155_v20 = vmul.f32 %v149_v16, %v149_v16  ;;  %v257_v21 = vmul.f32 %v251_v17, %v251_v17  ;;  %2266 = vmatprep.subr.bf16.mxu1 %v2537_v8  ;;  %v2541_v12 = vld [vmem:[%s3164_s4 + $0x50] sm:$0xff]   ;;  %v2542_v13 = vld [vmem:[%s3164_s4 + $0x20] sm:$0xff]  }
  0xfd   :  { %2607 = vrsqrt.f32 %v158_v14  ;;  %v157_v22 = vmul.f32 %v151_v18, %v151_v18  ;;  %v259_v23 = vmul.f32 %v253_v19, %v253_v19  ;;  %vm162_vm0 = vcmp.eq.f32.partialorder %v158_v14, inf  ;;  %v2545_v16 = vld [vmem:[%s3164_s4 + $0x60] sm:$0xff]   ;;  %v2546_v17 = vld [vmem:[%s3164_s4 + $0x30] sm:$0xff]   ;;  %v2547_v18 = vld [vmem:[%s3164_s4 + $0x68] sm:$0xff]  }
  0xfe   :  { %2609 = vrsqrt.f32 %v260_v15  ;;  %v165_v29 = vand.u32 2147483648, %v158_v14  ;;  %vm164_vm1 = vcmp.eq.f32.partialorder %v158_v14, 0.0  ;;  %vm264_vm2 = vcmp.eq.f32.partialorder %v260_v15, inf  ;;  %v2548_v19 = vld [vmem:[%s3164_s4 + $0x38] sm:$0xff]  }
  0xff   :  { %v159_v24 = vadd.f32 %v157_v22, %v155_v20  ;;  %v261_v25 = vadd.f32 %v259_v23, %v257_v21  ;;  %v267_v32 = vand.u32 2147483648, %v260_v15  ;;  %vm266_vm3 = vcmp.eq.f32.partialorder %v260_v15, 0.0  ;;  %v2549_v20 = vld [vmem:[%s3164_s4 + $0x70] sm:$0xff]   ;;  %v2550_v21 = vld [vmem:[%s3164_s4 + $0x78] sm:$0xff]   ;;  %v2551_v22 = vld [vmem:[%s3164_s4 + $0x80] sm:$0xff]  }
 0x101   :  { %2611 = vrsqrt.f32 %v159_v24  ;;  %vm169_vm4 = vcmp.eq.f32.partialorder %v159_v24, inf  ;;  %v172_v39 = vand.u32 2147483648, %v159_v24  ;;  %vm171_vm5 = vcmp.eq.f32.partialorder %v159_v24, 0.0 }
 0x102   :  { %2613 = vrsqrt.f32 %v261_v25  ;;  %vm271_vm6 = vcmp.eq.f32.partialorder %v261_v25, inf  ;;  %v274_v42 = vand.u32 2147483648, %v261_v25  ;;  %vm273_vm7 = vcmp.eq.f32.partialorder %v261_v25, 0.0 }
 0x107   :  { %v2608_v26 = vpop.eup %2607 }
 0x108   :  { %v2610_v27 = vpop.eup %2609  ;;  %v161_v28 = vmul.f32 %v2608_v26, %v158_v14 }
 0x109   :  { %v263_v30 = vmul.f32 %v2610_v27, %v260_v15 }
 0x10a   :  { %v163_v31 = vsel %vm162_vm0, %v158_v14, %v161_v28  ;;  %v2543_v14 = vld [vmem:[%s3164_s4 + $0x58] sm:$0xff]  }
 0x10b   :  { %v166_v33 = vsel %vm164_vm1, %v165_v29, %v163_v31  ;;  %v265_v34 = vsel %vm264_vm2, %v260_v15, %v263_v30  ;;  %v2612_v36 = vpop.eup %2611  ;;  %v2544_v15 = vld [vmem:[%s3164_s4 + $0x28] sm:$0xff]  }
 0x10c   :  { %174 = vst [vmem:[#allocation2 + $0x1] sm:$0xff] %v166_v33  ;;  %v268_v35 = vsel %vm266_vm3, %v267_v32, %v265_v34  ;;  %v2614_v37 = vpop.eup %2613  ;;  %v168_v38 = vmul.f32 %v2612_v36, %v159_v24 }
 0x10d   :  { %276 = vst [vmem:[#allocation2 + $0xc] sm:$0xff] %v268_v35  ;;  %v270_v40 = vmul.f32 %v2614_v37, %v261_v25  ;;  %v1906_v35 = vld [vmem:[%s3165_s3] ss:$0 sm:$0xff] }
 0x10e   :  { %v170_v41 = vsel %vm169_vm4, %v159_v24, %v168_v38 }
 0x10f   :  { %v173_v43 = vsel %vm171_vm5, %v172_v39, %v170_v41  ;;  %v272_v44 = vsel %vm271_vm6, %v261_v25, %v270_v40 }
 0x110   :  { %175 = vst [vmem:[#allocation2 + $0x9] sm:$0x1] %v173_v43  ;;  %v275_v45 = vsel %vm273_vm7, %v274_v42, %v272_v44 }
 0x111   :  { %277 = vst [vmem:[#allocation2 + $0x14] sm:$0x1] %v275_v45 }
 0x113   :  { %v278_v46 = vld [vmem:[#allocation2] sm:$0xff] }
 0x117   :  { %v279_v47 = vld [vmem:[#allocation2 + $0x8] sm:$0xff] }
 0x118   :  { %v281_v48 = vpack.c.bf16 %v279_v47, %v278_v46  ;;  %v280_v49 = vld [vmem:[#allocation2 + $0x10] sm:$0x3f] }
 0x119   :  { %v282_v50 = vpack.c.bf16 %v280_v49, %v280_v49 }
 0x11a   :  { %2242 = vmatprep.mubr.bf16.mxu1 %v281_v48  ;;  %v320_v51 = vshll.u32 %v281_v48, 16  ;;  %v318_v53 = vshrl.u32 %v281_v48, 16  ;;  %v546_v58 = vrot.slane %v281_v48, 1 }
 0x11b   :  { %2243 = vmatmul.mubr.bf16.vlgmr.msra.gmra.mrb[4].mxu1 %v282_v50  ;;  %v325_v52 = vshll.u32 %v282_v50, 16  ;;  %v329_v57 = vshrl.u32 %v282_v50, 16  ;;  %v547_v59 = vrot.slane %v282_v50, 1 }
 0x11c   :  { %v322_v54 = vrot.slane %v320_v51, 1  ;;  %2267 = vmatpush3.bf16.msra.mxu1 %v2537_v8  ;;  %v2562_v8 = vld [vmem:[%s3167_s6 + $0x10] sm:$0xff]  }
 0x11d   :  { %v327_v55 = vrot.slane %v325_v52, 1  ;;  %v548_v63 = vsel %vm545_vm9, %v546_v58, %v547_v59  ;;  %2268 = vmatprep.subr.bf16.mxu1 %v2539_v10 }
 0x11e   :  { %v323_v56 = vor.u32 %v322_v54, %v318_v53 }
 0x11f   :  { %v331_v61 = vor.u32 %v329_v57, %v327_v55 }
 0x120   :  { %v328_v60 = vsel %vm316_vm8, %v323_v56, %v327_v55  ;;  %2269 = vmatpush3.bf16.msra.mxu1 %v2539_v10  ;;  %v2564_v10 = vld [vmem:[%s3167_s6 + $0x18] sm:$0xff]  }
 0x121   :  { %2222 = vmatprep.mubr.bf16.mxu0 %v328_v60  ;;  %2270 = vmatprep.subr.bf16.mxu1 %v2541_v12 }
 0x122   :  { %2223 = vmatmul.mubr.bf16.vlgmr.msra.gmra.mrb[4].mxu0 %v331_v61  ;;  %v2552_v61 = vld [vmem:[%s3164_s4 + $0x88] sm:$0xff]  }
 0x123   :  { %2247 = vmatpush3.bf16.msra.mxu0 %v2852_v5  ;;  %2262 = vmatprep.mubr.bf16.mxu0 %v548_v63  ;;  %v2534_v5 = vld [vmem:[%s3163_s2 + $0xb8] sm:$0xff]   ;;  %v2553_v63 = vld [vmem:[%s3164_s4 + $0x90] sm:$0xff]  }
 0x124   :  { %2248 = vmatprep.subr.bf16.mxu0 %v2528_v62  ;;  %2271 = vmatpush3.bf16.msra.mxu1 %v2541_v12  ;;  %v2566_v12 = vld [vmem:[%s3167_s6 + $0x20] sm:$0xff]  }
 0x125   :  { %2272 = vmatprep.subr.bf16.mxu1 %v2543_v14 }
 0x127   :  { %2249 = vmatpush3.bf16.msra.mxu0 %v2528_v62 }
 0x128   :  { %2250 = vmatprep.subr.bf16.mxu0 %v2529_v0  ;;  %2273 = vmatpush3.bf16.msra.mxu1 %v2543_v14  ;;  %v2568_v14 = vld [vmem:[%s3167_s6 + $0x28] sm:$0xff]  }
 0x129   :  { %2274 = vmatprep.subr.bf16.mxu1 %v2545_v16 }
 0x12b   :  { %2251 = vmatpush3.bf16.msra.mxu0 %v2529_v0  ;;  %v2554_v0 = vld [vmem:[%s3164_s4 + $0x98] sm:$0xff]  }
 0x12c   :  { %2252 = vmatprep.subr.bf16.mxu0 %v2530_v1  ;;  %2275 = vmatpush3.bf16.msra.mxu1 %v2545_v16  ;;  %v2570_v16 = vld [vmem:[%s3167_s6 + $0x30] sm:$0xff]  }
 0x12d   :  { %2276 = vmatprep.subr.bf16.mxu1 %v2547_v18 }
 0x12f   :  { %2253 = vmatpush3.bf16.msra.mxu0 %v2530_v1  ;;  %v2555_v1 = vld [vmem:[%s3164_s4 + $0xa0] sm:$0xff]  }
 0x130   :  { %2254 = vmatprep.subr.bf16.mxu0 %v2531_v2  ;;  %2277 = vmatpush3.bf16.msra.mxu1 %v2547_v18  ;;  %v2572_v18 = vld [vmem:[%s3167_s6 + $0x38] sm:$0xff]  }
 0x131   :  { %2278 = vmatprep.subr.bf16.mxu1 %v2549_v20 }
 0x133   :  { %2255 = vmatpush3.bf16.msra.mxu0 %v2531_v2  ;;  %v2556_v2 = vld [vmem:[%s3164_s4 + $0xa8] sm:$0xff]  }
 0x134   :  { %2256 = vmatprep.subr.bf16.mxu0 %v2532_v3  ;;  %2279 = vmatpush3.bf16.msra.mxu1 %v2549_v20  ;;  %v2574_v20 = vld [vmem:[%s3167_s6 + $0x78] sm:$0xff]  }
 0x135   :  { %2280 = vmatprep.subr.bf16.mxu1 %v2550_v21 }
 0x137   :  { %2257 = vmatpush3.bf16.msra.mxu0 %v2532_v3  ;;  %v2557_v3 = vld [vmem:[%s3164_s4 + $0xb0] sm:$0xff]  }
 0x138   :  { %2258 = vmatprep.subr.bf16.mxu0 %v2533_v4  ;;  %2281 = vmatpush3.bf16.msra.mxu1 %v2550_v21  ;;  %v2575_v21 = vld [vmem:[%s3167_s6 + $0x80] sm:$0xff]  }
 0x139   :  { %2306 = vmatprep.subr.bf16.mxu1 %v2551_v22 }
 0x13b   :  { %2259 = vmatpush3.bf16.msra.mxu0 %v2533_v4  ;;  %v2558_v4 = vld [vmem:[%s3164_s4 + $0xb8] sm:$0xff]  }
 0x13c   :  { %2260 = vmatprep.subr.bf16.mxu0 %v2534_v5 }
 0x13f   :  { %2261 = vmatpush3.bf16.msra.mxu0 %v2534_v5  ;;  %v2559_v5 = vld [vmem:[%s3167_s6] sm:$0xff]  }
 0x140   :  { %2286 = vmatprep.subr.bf16.mxu0 %v2535_v6 }
 0x142   :  { %2263 = vmatmul.mubr.bf16.vlgmr.msra.gmra.mrb[8].mxu0 %v547_v59 }
 0x143   :  { %2287 = vmatpush3.bf16.msra.mxu0 %v2535_v6  ;;  %v2560_v6 = vld [vmem:[%s3167_s6 + $0x8] sm:$0xff]  }
 0x144   :  { %2288 = vmatprep.subr.bf16.mxu0 %v2536_v7 }
 0x147   :  { %2289 = vmatpush3.bf16.msra.mxu0 %v2536_v7  ;;  %v2561_v7 = vld [vmem:[%s3167_s6 + $0x40] sm:$0xff]  }
 0x148   :  { %2290 = vmatprep.subr.bf16.mxu0 %v2538_v9 }
 0x14b   :  { %2291 = vmatpush3.bf16.msra.mxu0 %v2538_v9  ;;  %v2563_v9 = vld [vmem:[%s3167_s6 + $0x48] sm:$0xff]  }
 0x14c   :  { %2292 = vmatprep.subr.bf16.mxu0 %v2540_v11 }
 0x14f   :  { %2293 = vmatpush3.bf16.msra.mxu0 %v2540_v11  ;;  %v2565_v11 = vld [vmem:[%s3167_s6 + $0x50] sm:$0xff]  }
 0x150   :  { %2294 = vmatprep.subr.bf16.mxu0 %v2542_v13 }
 0x153   :  { %2295 = vmatpush3.bf16.msra.mxu0 %v2542_v13  ;;  %v2567_v13 = vld [vmem:[%s3167_s6 + $0x58] sm:$0xff]  }
 0x154   :  { %2296 = vmatprep.subr.bf16.mxu0 %v2544_v15 }
 0x157   :  { %2297 = vmatpush3.bf16.msra.mxu0 %v2544_v15  ;;  %v2569_v15 = vld [vmem:[%s3167_s6 + $0x60] sm:$0xff]  }
 0x158   :  { %2298 = vmatprep.subr.bf16.mxu0 %v2546_v17 }
 0x15b   :  { %2299 = vmatpush3.bf16.msra.mxu0 %v2546_v17  ;;  %v2571_v17 = vld [vmem:[%s3167_s6 + $0x68] sm:$0xff]  }
 0x15c   :  { %2300 = vmatprep.subr.bf16.mxu0 %v2548_v19 }
 0x15f   :  { %2301 = vmatpush3.bf16.msra.mxu0 %v2548_v19  ;;  %v2573_v19 = vld [vmem:[%s3167_s6 + $0x70] sm:$0xff]  }
 0x160   :  { %2326 = vmatprep.subr.bf16.mxu0 %v2561_v7 }
 0x1ee   :  { %v2244_v23 = vpop.f32.mrb[4].mxu1 }
 0x1ef   :  { %v512_v24 = vpop.f32.mrb[5].mxu1 }
 0x1f0   :  { %v2245_v25 = vpop.f32.mrb[6].mxu1 }
 0x1f1   :  { %v515_v26 = vpop.f32.mrb[7].mxu1 }
 0x1f5   :  { %v2224_v27 = vpop.f32.mrb[4].mxu0 }
 0x1f6   :  { %v521_v28 = vadd.f32 %v2244_v23, %v2224_v27  ;;  %v416_v29 = vpop.f32.mrb[5].mxu0 }
 0x1f7   :  { %v513_v30 = vadd.f32 %v512_v24, %v416_v29  ;;  %v2225_v31 = vpop.f32.mrb[6].mxu0 }
 0x1f8   :  { %v419_v32 = vpop.f32.mrb[7].mxu0 }
 0x1f9   :  { %v516_v33 = vadd.f32 %v515_v26, %v419_v32 }
 0x215   :  { %v2264_v34 = vpop.f32.mrb[8].mxu0 }
 0x216   :  { %v649_v36 = vadd.f32 %v2264_v34, %v521_v28  ;;  %v633_v37 = vpop.f32.mrb[9].mxu0  ;;  %v1965_v34 = vld [vmem:[%s3168_s5] ss:$0 sm:$0xff] }
 0x217   :  { %v647_v38 = vadd.f32 %v633_v37, %v513_v30  ;;  %v2265_v39 = vpop.f32.mrb[10].mxu0 }
 0x218   :  { %v659_v40 = vadd.f32 %v1906_v35, %v649_v36  ;;  %v636_v41 = vpop.f32.mrb[11].mxu0 }
 0x219   :  { %v657_v42 = vadd.f32 %v1906_v35, %v647_v38  ;;  %v648_v43 = vadd.f32 %v636_v41, %v516_v33 }
 0x21a   :  { %1908 = vst [vmem:[%s3166_s10 + $0x15] sm:$0xf] %v659_v40  ;;  %668 = vst [vmem:[#allocation2 + $0x11] sm:$0xf] %v659_v40 }
 0x21b   :  { %660 = vst [vmem:[%s3166_s10] sm:$0xff] %v657_v42  ;;  %662 = vst [vmem:[#allocation2 + $0x1] sm:$0xff] %v657_v42  ;;  %v658_v44 = vadd.f32 %v1906_v35, %v648_v43 }
 0x21d   :  { %661 = vst [vmem:[%s3166_s10 + $0x8] sm:$0x1] %v658_v44  ;;  %663 = vst [vmem:[#allocation2 + $0x9] sm:$0xf9] %v658_v44  }
 0x21e   :  { %1907 = vst [vmem:[%s3166_s10 + $0xd] sm:$0xf8] %v658_v44 }
 0x222   :  { %v669_v45 = vld [vmem:[#allocation2] sm:$0xff] }
 0x224   :  { %v670_v46 = vld [vmem:[#allocation2 + $0x8] sm:$0xff]  ;;  %v671_v47 = vld [vmem:[#allocation2 + $0x10] sm:$0x3f] }
 0x225   :  { %v672_v48 = vpack.c.bf16 %v670_v46, %v669_v45  ;;  %v673_v49 = vpack.c.bf16 %v671_v47, %v671_v47 }
 0x227   :  { %2302 = vmatprep.mubr.bf16.mxu0 %v672_v48  ;;  %v710_v50 = vshll.u32 %v672_v48, 16  ;;  %v715_v51 = vshll.u32 %v673_v49, 16  ;;  %v708_v52 = vshrl.u32 %v672_v48, 16  ;;  %v719_v56 = vshrl.u32 %v673_v49, 16 }
 0x228   :  { %2303 = vmatmul.mubr.bf16.vlgmr.msra.gmra.mrb[12].mxu0 %v673_v49  ;;  %v935_v57 = vrot.slane %v672_v48, 1  ;;  %v936_v58 = vrot.slane %v673_v49, 1 }
 0x229   :  { %v712_v53 = vrot.slane %v710_v50, 1  ;;  %v717_v54 = vrot.slane %v715_v51, 1  ;;  %2327 = vmatpush3.bf16.msra.mxu0 %v2561_v7  ;;  %v2586_v7 = vld [vmem:[%s3170_s8 + $0x10] sm:$0xff]  }
 0x22a   :  { %v937_v62 = vsel %vm545_vm9, %v935_v57, %v936_v58  ;;  %2328 = vmatprep.subr.bf16.mxu0 %v2563_v9 }
 0x22b   :  { %v713_v55 = vor.u32 %v712_v53, %v708_v52  ;;  %v721_v60 = vor.u32 %v719_v56, %v717_v54 }
 0x22d   :  { %v718_v59 = vsel %vm316_vm8, %v713_v55, %v717_v54  ;;  %2329 = vmatpush3.bf16.msra.mxu0 %v2563_v9  ;;  %v2588_v9 = vld [vmem:[%s3170_s8 + $0x18] sm:$0xff]  }
 0x22e   :  { %2282 = vmatprep.mubr.bf16.mxu1 %v718_v59  ;;  %2330 = vmatprep.subr.bf16.mxu0 %v2565_v11 }
 0x22f   :  { %2283 = vmatmul.mubr.bf16.vlgmr.msra.gmra.mrb[8].mxu1 %v721_v60  ;;  %v2576_v60 = vld [vmem:[%s3167_s6 + $0x88] sm:$0xff]  }
 0x230   :  { %2307 = vmatpush3.bf16.msra.mxu1 %v2551_v22  ;;  %2322 = vmatprep.mubr.bf16.mxu1 %v937_v62  ;;  %v2577_v62 = vld [vmem:[%s3167_s6 + $0x90] sm:$0xff]  }
 0x231   :  { %2308 = vmatprep.subr.bf16.mxu1 %v2552_v61  ;;  %2331 = vmatpush3.bf16.msra.mxu0 %v2565_v11  ;;  %v2590_v11 = vld [vmem:[%s3170_s8 + $0x20] sm:$0xff]  }
 0x232   :  { %2332 = vmatprep.subr.bf16.mxu0 %v2567_v13 }
 0x234   :  { %2309 = vmatpush3.bf16.msra.mxu1 %v2552_v61 }
 0x235   :  { %2310 = vmatprep.subr.bf16.mxu1 %v2553_v63  ;;  %2333 = vmatpush3.bf16.msra.mxu0 %v2567_v13  ;;  %v2592_v13 = vld [vmem:[%s3170_s8 + $0x28] sm:$0xff]  }
 0x236   :  { %2334 = vmatprep.subr.bf16.mxu0 %v2569_v15 }
 0x238   :  { %2311 = vmatpush3.bf16.msra.mxu1 %v2553_v63  ;;  %v2578_v63 = vld [vmem:[%s3167_s6 + $0x98] sm:$0xff]  }
 0x239   :  { %2312 = vmatprep.subr.bf16.mxu1 %v2554_v0  ;;  %2335 = vmatpush3.bf16.msra.mxu0 %v2569_v15  ;;  %v2594_v15 = vld [vmem:[%s3170_s8 + $0x30] sm:$0xff]  }
 0x23a   :  { %2336 = vmatprep.subr.bf16.mxu0 %v2571_v17 }
 0x23c   :  { %2313 = vmatpush3.bf16.msra.mxu1 %v2554_v0  ;;  %v2579_v0 = vld [vmem:[%s3167_s6 + $0xa0] sm:$0xff]  }
 0x23d   :  { %2314 = vmatprep.subr.bf16.mxu1 %v2555_v1  ;;  %2337 = vmatpush3.bf16.msra.mxu0 %v2571_v17  ;;  %v2596_v17 = vld [vmem:[%s3170_s8 + $0x38] sm:$0xff]  }
 0x23e   :  { %2338 = vmatprep.subr.bf16.mxu0 %v2573_v19 }
 0x240   :  { %2315 = vmatpush3.bf16.msra.mxu1 %v2555_v1  ;;  %v2580_v1 = vld [vmem:[%s3167_s6 + $0xa8] sm:$0xff]  }
 0x241   :  { %2316 = vmatprep.subr.bf16.mxu1 %v2556_v2  ;;  %2339 = vmatpush3.bf16.msra.mxu0 %v2573_v19  ;;  %v2598_v19 = vld [vmem:[%s3170_s8 + $0x78] sm:$0xff]  }
 0x242   :  { %2340 = vmatprep.subr.bf16.mxu0 %v2574_v20 }
 0x244   :  { %2317 = vmatpush3.bf16.msra.mxu1 %v2556_v2  ;;  %v2581_v2 = vld [vmem:[%s3167_s6 + $0xb0] sm:$0xff]  }
 0x245   :  { %2318 = vmatprep.subr.bf16.mxu1 %v2557_v3  ;;  %2341 = vmatpush3.bf16.msra.mxu0 %v2574_v20  ;;  %v2599_v20 = vld [vmem:[%s3170_s8 + $0x80] sm:$0xff]  }
 0x246   :  { %2366 = vmatprep.subr.bf16.mxu0 %v2575_v21 }
 0x248   :  { %2319 = vmatpush3.bf16.msra.mxu1 %v2557_v3  ;;  %v2582_v3 = vld [vmem:[%s3167_s6 + $0xb8] sm:$0xff]  }
 0x249   :  { %2320 = vmatprep.subr.bf16.mxu1 %v2558_v4 }
 0x24c   :  { %2321 = vmatpush3.bf16.msra.mxu1 %v2558_v4  ;;  %v2583_v4 = vld [vmem:[%s3170_s8] sm:$0xff]  }
 0x24d   :  { %2346 = vmatprep.subr.bf16.mxu1 %v2559_v5 }
 0x24f   :  { %2323 = vmatmul.mubr.bf16.vlgmr.msra.gmra.mrb[12].mxu1 %v936_v58 }
 0x250   :  { %2347 = vmatpush3.bf16.msra.mxu1 %v2559_v5  ;;  %v2584_v5 = vld [vmem:[%s3170_s8 + $0x8] sm:$0xff]  }
 0x251   :  { %2348 = vmatprep.subr.bf16.mxu1 %v2560_v6 }
 0x254   :  { %2349 = vmatpush3.bf16.msra.mxu1 %v2560_v6  ;;  %v2585_v6 = vld [vmem:[%s3170_s8 + $0x40] sm:$0xff]  }
 0x255   :  { %2350 = vmatprep.subr.bf16.mxu1 %v2562_v8 }
 0x258   :  { %2351 = vmatpush3.bf16.msra.mxu1 %v2562_v8  ;;  %v2587_v8 = vld [vmem:[%s3170_s8 + $0x48] sm:$0xff]  }
 0x259   :  { %2352 = vmatprep.subr.bf16.mxu1 %v2564_v10 }
 0x25c   :  { %2353 = vmatpush3.bf16.msra.mxu1 %v2564_v10  ;;  %v2589_v10 = vld [vmem:[%s3170_s8 + $0x50] sm:$0xff]  }
 0x25d   :  { %2354 = vmatprep.subr.bf16.mxu1 %v2566_v12 }
 0x260   :  { %2355 = vmatpush3.bf16.msra.mxu1 %v2566_v12  ;;  %v2591_v12 = vld [vmem:[%s3170_s8 + $0x58] sm:$0xff]  }
 0x261   :  { %2356 = vmatprep.subr.bf16.mxu1 %v2568_v14 }
 0x264   :  { %2357 = vmatpush3.bf16.msra.mxu1 %v2568_v14  ;;  %v2593_v14 = vld [vmem:[%s3170_s8 + $0x60] sm:$0xff]  }
 0x265   :  { %2358 = vmatprep.subr.bf16.mxu1 %v2570_v16 }
 0x268   :  { %2359 = vmatpush3.bf16.msra.mxu1 %v2570_v16  ;;  %v2595_v16 = vld [vmem:[%s3170_s8 + $0x68] sm:$0xff]  }
 0x269   :  { %2360 = vmatprep.subr.bf16.mxu1 %v2572_v18 }
 0x26c   :  { %2361 = vmatpush3.bf16.msra.mxu1 %v2572_v18  ;;  %v2597_v18 = vld [vmem:[%s3170_s8 + $0x70] sm:$0xff]  }
 0x26d   :  { %2386 = vmatprep.subr.bf16.mxu1 %v2585_v6 }
 0x2fb   :  { %v2304_v22 = vpop.f32.mrb[12].mxu0 }
 0x2fc   :  { %v902_v23 = vpop.f32.mrb[13].mxu0 }
 0x2fd   :  { %v2305_v24 = vpop.f32.mrb[14].mxu0 }
 0x2fe   :  { %v905_v25 = vpop.f32.mrb[15].mxu0 }
 0x302   :  { %v2284_v26 = vpop.f32.mrb[8].mxu1 }
 0x303   :  { %v911_v27 = vadd.f32 %v2304_v22, %v2284_v26  ;;  %v806_v28 = vpop.f32.mrb[9].mxu1 }
 0x304   :  { %v903_v29 = vadd.f32 %v902_v23, %v806_v28  ;;  %v2285_v30 = vpop.f32.mrb[10].mxu1 }
 0x305   :  { %v809_v31 = vpop.f32.mrb[11].mxu1 }
 0x306   :  { %v906_v32 = vadd.f32 %v905_v25, %v809_v31 }
 0x322   :  { %v2324_v33 = vpop.f32.mrb[12].mxu1 }
 0x323   :  { %v1038_v35 = vadd.f32 %v2324_v33, %v911_v27  ;;  %v1022_v36 = vpop.f32.mrb[13].mxu1  ;;  %v2024_v33 = vld [vmem:[%s3171_s7] ss:$0 sm:$0xff] }
 0x324   :  { %v1036_v37 = vadd.f32 %v1022_v36, %v903_v29  ;;  %v2325_v38 = vpop.f32.mrb[14].mxu1 }
 0x325   :  { %v1048_v39 = vadd.f32 %v1965_v34, %v1038_v35  ;;  %v1025_v40 = vpop.f32.mrb[15].mxu1 }
 0x326   :  { %v1046_v41 = vadd.f32 %v1965_v34, %v1036_v37  ;;  %v1037_v42 = vadd.f32 %v1025_v40, %v906_v32 }
 0x327   :  { %1967 = vst [vmem:[%s3169_s11 + $0x15] sm:$0xf] %v1048_v39  ;;  %1057 = vst [vmem:[#allocation2 + $0x11] sm:$0xf] %v1048_v39 }
 0x328   :  { %1049 = vst [vmem:[%s3169_s11] sm:$0xff] %v1046_v41  ;;  %1051 = vst [vmem:[#allocation2 + $0x1] sm:$0xff] %v1046_v41  ;;  %v1047_v43 = vadd.f32 %v1965_v34, %v1037_v42 }
 0x32a   :  { %1050 = vst [vmem:[%s3169_s11 + $0x8] sm:$0x1] %v1047_v43  ;;  %1052 = vst [vmem:[#allocation2 + $0x9] sm:$0xf9] %v1047_v43  }
 0x32b   :  { %1966 = vst [vmem:[%s3169_s11 + $0xd] sm:$0xf8] %v1047_v43 }
 0x32f   :  { %v1058_v44 = vld [vmem:[#allocation2] sm:$0xff] }
 0x331   :  { %v1059_v45 = vld [vmem:[#allocation2 + $0x8] sm:$0xff]  ;;  %v1060_v46 = vld [vmem:[#allocation2 + $0x10] sm:$0x3f] }
 0x332   :  { %v1061_v47 = vpack.c.bf16 %v1059_v45, %v1058_v44  ;;  %v1062_v48 = vpack.c.bf16 %v1060_v46, %v1060_v46 }
 0x334   :  { %2362 = vmatprep.mubr.bf16.mxu1 %v1061_v47  ;;  %v1099_v49 = vshll.u32 %v1061_v47, 16  ;;  %v1104_v50 = vshll.u32 %v1062_v48, 16  ;;  %v1097_v51 = vshrl.u32 %v1061_v47, 16  ;;  %v1108_v55 = vshrl.u32 %v1062_v48, 16 }
 0x335   :  { %2363 = vmatmul.mubr.bf16.vlgmr.msra.gmra.mrb[16].mxu1 %v1062_v48  ;;  %v1324_v56 = vrot.slane %v1061_v47, 1  ;;  %v1325_v57 = vrot.slane %v1062_v48, 1 }
 0x336   :  { %v1101_v52 = vrot.slane %v1099_v49, 1  ;;  %v1106_v53 = vrot.slane %v1104_v50, 1  ;;  %2387 = vmatpush3.bf16.msra.mxu1 %v2585_v6 }
 0x337   :  { %v1326_v61 = vsel %vm545_vm9, %v1324_v56, %v1325_v57  ;;  %2388 = vmatprep.subr.bf16.mxu1 %v2587_v8 }
 0x338   :  { %v1102_v54 = vor.u32 %v1101_v52, %v1097_v51  ;;  %v1110_v59 = vor.u32 %v1108_v55, %v1106_v53 }
 0x33a   :  { %v1107_v58 = vsel %vm316_vm8, %v1102_v54, %v1106_v53  ;;  %2389 = vmatpush3.bf16.msra.mxu1 %v2587_v8 }
 0x33b   :  { %2342 = vmatprep.mubr.bf16.mxu0 %v1107_v58  ;;  %2390 = vmatprep.subr.bf16.mxu1 %v2589_v10 }
 0x33c   :  { %2343 = vmatmul.mubr.bf16.vlgmr.msra.gmra.mrb[16].mxu0 %v1110_v59  ;;  %v2600_v59 = vld [vmem:[%s3170_s8 + $0x88] sm:$0xff]  }
 0x33d   :  { %2367 = vmatpush3.bf16.msra.mxu0 %v2575_v21  ;;  %2382 = vmatprep.mubr.bf16.mxu0 %v1326_v61  ;;  %v2601_v61 = vld [vmem:[%s3170_s8 + $0x90] sm:$0xff]  }
 0x33e   :  { %2368 = vmatprep.subr.bf16.mxu0 %v2576_v60  ;;  %2391 = vmatpush3.bf16.msra.mxu1 %v2589_v10 }
 0x33f   :  { %2392 = vmatprep.subr.bf16.mxu1 %v2591_v12 }
 0x341   :  { %2369 = vmatpush3.bf16.msra.mxu0 %v2576_v60 }
 0x342   :  { %2370 = vmatprep.subr.bf16.mxu0 %v2577_v62  ;;  %2393 = vmatpush3.bf16.msra.mxu1 %v2591_v12 }
 0x343   :  { %2394 = vmatprep.subr.bf16.mxu1 %v2593_v14 }
 0x345   :  { %2371 = vmatpush3.bf16.msra.mxu0 %v2577_v62  ;;  %v2602_v62 = vld [vmem:[%s3170_s8 + $0x98] sm:$0xff]  }
 0x346   :  { %2372 = vmatprep.subr.bf16.mxu0 %v2578_v63  ;;  %2395 = vmatpush3.bf16.msra.mxu1 %v2593_v14 }
 0x347   :  { %2396 = vmatprep.subr.bf16.mxu1 %v2595_v16 }
 0x349   :  { %2373 = vmatpush3.bf16.msra.mxu0 %v2578_v63  ;;  %v2603_v63 = vld [vmem:[%s3170_s8 + $0xa0] sm:$0xff]  }
 0x34a   :  { %2374 = vmatprep.subr.bf16.mxu0 %v2579_v0  ;;  %2397 = vmatpush3.bf16.msra.mxu1 %v2595_v16 }
 0x34b   :  { %2398 = vmatprep.subr.bf16.mxu1 %v2597_v18 }
 0x34d   :  { %2375 = vmatpush3.bf16.msra.mxu0 %v2579_v0  ;;  %v2604_v0 = vld [vmem:[%s3170_s8 + $0xa8] sm:$0xff]  }
 0x34e   :  { %2376 = vmatprep.subr.bf16.mxu0 %v2580_v1  ;;  %2399 = vmatpush3.bf16.msra.mxu1 %v2597_v18 }
 0x34f   :  { %2400 = vmatprep.subr.bf16.mxu1 %v2598_v19 }
 0x351   :  { %2377 = vmatpush3.bf16.msra.mxu0 %v2580_v1  ;;  %v2605_v1 = vld [vmem:[%s3170_s8 + $0xb0] sm:$0xff]  }
 0x352   :  { %2378 = vmatprep.subr.bf16.mxu0 %v2581_v2  ;;  %2401 = vmatpush3.bf16.msra.mxu1 %v2598_v19 }
 0x353   :  { %2426 = vmatprep.subr.bf16.mxu1 %v2599_v20 }
 0x355   :  { %2379 = vmatpush3.bf16.msra.mxu0 %v2581_v2  ;;  %v2606_v2 = vld [vmem:[%s3170_s8 + $0xb8] sm:$0xff]  }
 0x356   :  { %2380 = vmatprep.subr.bf16.mxu0 %v2582_v3 }
 0x359   :  { %2381 = vmatpush3.bf16.msra.mxu0 %v2582_v3 }
 0x35a   :  { %2406 = vmatprep.subr.bf16.mxu0 %v2583_v4 }
 0x35c   :  { %2383 = vmatmul.mubr.bf16.vlgmr.msra.gmra.mrb[20].mxu0 %v1325_v57 }
 0x35d   :  { %2407 = vmatpush3.bf16.msra.mxu0 %v2583_v4 }
 0x35e   :  { %2408 = vmatprep.subr.bf16.mxu0 %v2584_v5 }
 0x361   :  { %2409 = vmatpush3.bf16.msra.mxu0 %v2584_v5 }
 0x362   :  { %2410 = vmatprep.subr.bf16.mxu0 %v2586_v7 }
 0x365   :  { %2411 = vmatpush3.bf16.msra.mxu0 %v2586_v7 }
 0x366   :  { %2412 = vmatprep.subr.bf16.mxu0 %v2588_v9 }
 0x369   :  { %2413 = vmatpush3.bf16.msra.mxu0 %v2588_v9 }
 0x36a   :  { %2414 = vmatprep.subr.bf16.mxu0 %v2590_v11 }
 0x36d   :  { %2415 = vmatpush3.bf16.msra.mxu0 %v2590_v11 }
 0x36e   :  { %2416 = vmatprep.subr.bf16.mxu0 %v2592_v13 }
 0x371   :  { %2417 = vmatpush3.bf16.msra.mxu0 %v2592_v13 }
 0x372   :  { %2418 = vmatprep.subr.bf16.mxu0 %v2594_v15 }
 0x375   :  { %2419 = vmatpush3.bf16.msra.mxu0 %v2594_v15  ;;  %v2083_v15 = vld [vmem:[%s3173_s9] ss:$0 sm:$0xff] }
 0x376   :  { %2420 = vmatprep.subr.bf16.mxu0 %v2596_v17 }
 0x379   :  { %2421 = vmatpush3.bf16.msra.mxu0 %v2596_v17 }
 0x408   :  { %v2364_v21 = vpop.f32.mrb[16].mxu1 }
 0x409   :  { %v1291_v22 = vpop.f32.mrb[17].mxu1 }
 0x40a   :  { %v2365_v23 = vpop.f32.mrb[18].mxu1 }
 0x40b   :  { %v1294_v24 = vpop.f32.mrb[19].mxu1 }
 0x40f   :  { %v2344_v25 = vpop.f32.mrb[16].mxu0 }
 0x410   :  { %v1300_v26 = vadd.f32 %v2364_v21, %v2344_v25  ;;  %v1195_v27 = vpop.f32.mrb[17].mxu0 }
 0x411   :  { %v1292_v28 = vadd.f32 %v1291_v22, %v1195_v27  ;;  %v2345_v29 = vpop.f32.mrb[18].mxu0 }
 0x412   :  { %v1198_v30 = vpop.f32.mrb[19].mxu0 }
 0x413   :  { %v1295_v31 = vadd.f32 %v1294_v24, %v1198_v30 }
 0x42f   :  { %v2384_v32 = vpop.f32.mrb[20].mxu0 }
 0x430   :  { %v1427_v34 = vadd.f32 %v2384_v32, %v1300_v26  ;;  %v1411_v35 = vpop.f32.mrb[21].mxu0 }
 0x431   :  { %v1425_v36 = vadd.f32 %v1411_v35, %v1292_v28  ;;  %v2385_v37 = vpop.f32.mrb[22].mxu0 }
 0x432   :  { %v1437_v38 = vadd.f32 %v2024_v33, %v1427_v34  ;;  %v1414_v39 = vpop.f32.mrb[23].mxu0 }
 0x433   :  { %v1435_v40 = vadd.f32 %v2024_v33, %v1425_v36  ;;  %v1426_v41 = vadd.f32 %v1414_v39, %v1295_v31 }
 0x434   :  { %2026 = vst [vmem:[%s3172_s12 + $0x15] sm:$0xf] %v1437_v38  ;;  %1446 = vst [vmem:[#allocation2 + $0x11] sm:$0xf] %v1437_v38 }
 0x435   :  { %1438 = vst [vmem:[%s3172_s12] sm:$0xff] %v1435_v40  ;;  %1440 = vst [vmem:[#allocation2 + $0x1] sm:$0xff] %v1435_v40  ;;  %v1436_v42 = vadd.f32 %v2024_v33, %v1426_v41 }
 0x437   :  { %1439 = vst [vmem:[%s3172_s12 + $0x8] sm:$0x1] %v1436_v42  ;;  %1441 = vst [vmem:[#allocation2 + $0x9] sm:$0xf9] %v1436_v42  }
 0x438   :  { %2025 = vst [vmem:[%s3172_s12 + $0xd] sm:$0xf8] %v1436_v42 }
 0x43c   :  { %v1447_v43 = vld [vmem:[#allocation2] sm:$0xff] }
 0x43e   :  { %v1448_v44 = vld [vmem:[#allocation2 + $0x8] sm:$0xff]  ;;  %v1449_v45 = vld [vmem:[#allocation2 + $0x10] sm:$0x3f] }
 0x43f   :  { %v1450_v46 = vpack.c.bf16 %v1448_v44, %v1447_v43  ;;  %v1451_v47 = vpack.c.bf16 %v1449_v45, %v1449_v45 }
 0x441   :  { %2422 = vmatprep.mubr.bf16.mxu0 %v1450_v46  ;;  %v1488_v48 = vshll.u32 %v1450_v46, 16  ;;  %v1493_v49 = vshll.u32 %v1451_v47, 16  ;;  %v1486_v50 = vshrl.u32 %v1450_v46, 16  ;;  %v1497_v54 = vshrl.u32 %v1451_v47, 16 }
 0x442   :  { %2423 = vmatmul.mubr.bf16.vlgmr.msra.gmra.mrb[24].mxu0 %v1451_v47  ;;  %v1713_v55 = vrot.slane %v1450_v46, 1  ;;  %v1714_v56 = vrot.slane %v1451_v47, 1 }
 0x443   :  { %v1490_v51 = vrot.slane %v1488_v48, 1  ;;  %v1495_v52 = vrot.slane %v1493_v49, 1 }
 0x444   :  { %v1715_v60 = vsel %vm545_vm9, %v1713_v55, %v1714_v56 }
 0x445   :  { %v1491_v53 = vor.u32 %v1490_v51, %v1486_v50  ;;  %v1499_v58 = vor.u32 %v1497_v54, %v1495_v52 }
 0x447   :  { %v1496_v57 = vsel %vm316_vm8, %v1491_v53, %v1495_v52 }
 0x448   :  { %2402 = vmatprep.mubr.bf16.mxu1 %v1496_v57 }
 0x449   :  { %2403 = vmatmul.mubr.bf16.vlgmr.msra.gmra.mrb[20].mxu1 %v1499_v58 }
 0x44a   :  { %2427 = vmatpush3.bf16.msra.mxu1 %v2599_v20  ;;  %2442 = vmatprep.mubr.bf16.mxu1 %v1715_v60 }
 0x44b   :  { %2428 = vmatprep.subr.bf16.mxu1 %v2600_v59 }
 0x44e   :  { %2429 = vmatpush3.bf16.msra.mxu1 %v2600_v59 }
 0x44f   :  { %2430 = vmatprep.subr.bf16.mxu1 %v2601_v61 }
 0x452   :  { %2431 = vmatpush3.bf16.msra.mxu1 %v2601_v61 }
 0x453   :  { %2432 = vmatprep.subr.bf16.mxu1 %v2602_v62 }
 0x456   :  { %2433 = vmatpush3.bf16.msra.mxu1 %v2602_v62 }
 0x457   :  { %2434 = vmatprep.subr.bf16.mxu1 %v2603_v63 }
 0x45a   :  { %2435 = vmatpush3.bf16.msra.mxu1 %v2603_v63 }
 0x45b   :  { %2436 = vmatprep.subr.bf16.mxu1 %v2604_v0 }
 0x45e   :  { %2437 = vmatpush3.bf16.msra.mxu1 %v2604_v0 }
 0x45f   :  { %2438 = vmatprep.subr.bf16.mxu1 %v2605_v1 }
 0x462   :  { %2439 = vmatpush3.bf16.msra.mxu1 %v2605_v1 }
 0x463   :  { %2440 = vmatprep.subr.bf16.mxu1 %v2606_v2 }
 0x466   :  { %2441 = vmatpush3.bf16.msra.mxu1 %v2606_v2 }
 0x469   :  { %2443 = vmatmul.mubr.bf16.vlgmr.msra.gmra.mrb[24].mxu1 %v1714_v56 }
 0x515   :  { %v2424_v3 = vpop.f32.mrb[24].mxu0 }
 0x516   :  { %v1680_v4 = vpop.f32.mrb[25].mxu0 }
 0x517   :  { %v2425_v5 = vpop.f32.mrb[26].mxu0 }
 0x518   :  { %v1683_v6 = vpop.f32.mrb[27].mxu0 }
 0x51c   :  { %v2404_v7 = vpop.f32.mrb[20].mxu1 }
 0x51d   :  { %v1689_v8 = vadd.f32 %v2424_v3, %v2404_v7  ;;  %v1584_v9 = vpop.f32.mrb[21].mxu1 }
 0x51e   :  { %v1681_v10 = vadd.f32 %v1680_v4, %v1584_v9  ;;  %v2405_v11 = vpop.f32.mrb[22].mxu1 }
 0x51f   :  { %v1587_v12 = vpop.f32.mrb[23].mxu1 }
 0x520   :  { %v1684_v13 = vadd.f32 %v1683_v6, %v1587_v12 }
 0x53c   :  { %v2444_v14 = vpop.f32.mrb[24].mxu1 }
 0x53d   :  { %v1816_v16 = vadd.f32 %v2444_v14, %v1689_v8  ;;  %v1800_v17 = vpop.f32.mrb[25].mxu1 }
 0x53e   :  { %v1814_v18 = vadd.f32 %v1800_v17, %v1681_v10  ;;  %v2445_v19 = vpop.f32.mrb[26].mxu1 }
 0x53f   :  { %v1826_v20 = vadd.f32 %v2083_v15, %v1816_v16  ;;  %v1803_v21 = vpop.f32.mrb[27].mxu1 }
 0x540   :  { %v1824_v22 = vadd.f32 %v2083_v15, %v1814_v18  ;;  %v1815_v23 = vadd.f32 %v1803_v21, %v1684_v13 }
 0x541   :  { %2085 = vst [vmem:[%s3174_s13 + $0x15] sm:$0xf] %v1826_v20 }
 0x542   :  { %1827 = vst [vmem:[%s3174_s13] sm:$0xff] %v1824_v22  ;;  %v1825_v24 = vadd.f32 %v2083_v15, %v1815_v23 }
 0x544   :  { %1828 = vst [vmem:[%s3174_s13 + $0x8] sm:$0x1] %v1825_v24  ;;  %2084 = vst [vmem:[%s3174_s13 + $0xd] sm:$0xf8] %v1825_v24 }

</bundles_post_ra>
